<compile_context>
chip_gen: v7x
topology: tpu7x:2x2x1
jax: 0.10.0
libtpu: 0.0.40
codegen_flags: <defaults>
</compile_context>

<pallas_src>
import functools

import jax
import jax.numpy as jnp
from jax.experimental import pallas as pl
from jax.experimental.pallas import tpu as pltpu


def _ce_partial_kernel(x_ref, w_ref, b_ref, tgt_ref, out_ref, *, n_valid):
    """One batch tile: partial sum of per-row NLL (padded rows masked to 0)."""
    i = pl.program_id(0)

    # In-kernel bf16 cast of the activations; weight arrives bf16 and resident.
    x = x_ref[...].astype(jnp.bfloat16)              # [TN, D]
    w = w_ref[...]                                   # [Cp, D] (PyTorch [C, D] layout)

    # logits[r, c] = sum_d x[r, d] * w[c, d]  -- transpose folded into the contraction.
    logits = jax.lax.dot_general(
        x, w,
        dimension_numbers=(((1,), (1,)), ((), ())),
        preferred_element_type=jnp.float32)          # [TN, Cp] f32
    logits = logits + b_ref[...]                     # bias [1, Cp]; padded classes = -1e30

    tn, cp = logits.shape

    # Numerically-stable row-wise log-sum-exp (f32 throughout).
    m = jnp.max(logits, axis=-1, keepdims=True)                               # [TN, 1]
    lse = jnp.log(jnp.sum(jnp.exp(logits - m), axis=-1, keepdims=True)) + m   # [TN, 1]

    # Target-class logit per row via one-hot select (no dynamic gather on TPU).
    tgt_col = tgt_ref[...]                                                    # [TN, 1] i32
    cls = jax.lax.broadcasted_iota(jnp.int32, (tn, cp), 1)
    picked = jnp.sum(jnp.where(cls == tgt_col, logits, 0.0),
                     axis=-1, keepdims=True)                                  # [TN, 1]

    nll = lse - picked                                                        # [TN, 1]

    # Mask padded tail rows (global row index >= true batch size).
    row = i * tn + jax.lax.broadcasted_iota(jnp.int32, (tn, 1), 0)
    nll = jnp.where(row < n_valid, nll, 0.0)

    # Per-tile partial sum -> independent output block (batch axis is "parallel").
    out_ref[...] = jnp.sum(nll).reshape(1, 1, 1)


@functools.partial(jax.jit, static_argnames=("alpha", "block_n"))
def multi_losses3_forward(loss, predicts, targets, weight, bias, *, alpha, block_n=256):
    """predicts: [N, D] f32, targets: [N] int, weight: [C, D] (PyTorch layout), bias: [C]."""
    n, d = predicts.shape
    c = weight.shape[0]

    num_tiles = pl.cdiv(n, block_n)
    n_pad = num_tiles * block_n
    c_pad = ((c + 127) // 128) * 128

    # Batch padding (kernel masks the tail rows; denominator uses the true N).
    x = predicts.astype(jnp.float32)
    tgt = targets.astype(jnp.int32)
    if n_pad != n:
        x = jnp.pad(x, ((0, n_pad - n), (0, 0)))
        tgt = jnp.pad(tgt, (0, n_pad - n))
    tgt2 = tgt.reshape(n_pad, 1)

    # Class padding: zero weights, -1e30 bias -> padded classes never win max,
    # contribute exp(~-inf)=0 to the sum, and are never selected by valid targets.
    wp = weight.astype(jnp.bfloat16)
    bp = bias.astype(jnp.float32)
    if c_pad != c:
        wp = jnp.pad(wp, ((0, c_pad - c), (0, 0)))
        bp = jnp.pad(bp, (0, c_pad - c), constant_values=-1e30)
    bp = bp.reshape(1, c_pad)

    kernel = functools.partial(_ce_partial_kernel, n_valid=n)

    partials = pl.pallas_call(
        kernel,
        out_shape=jax.ShapeDtypeStruct((num_tiles, 1, 1), jnp.float32),
        grid_spec=pltpu.PrefetchScalarGridSpec(
            num_scalar_prefetch=0,
            grid=(num_tiles,),
            in_specs=[
                pl.BlockSpec((block_n, d), lambda i: (i, 0)),      # x tile (f32, cast in-kernel)
                pl.BlockSpec((c_pad, d), lambda i: (0, 0)),        # W resident (bf16)
                pl.BlockSpec((1, c_pad), lambda i: (0, 0)),        # bias resident (f32)
                pl.BlockSpec((block_n, 1), lambda i: (i, 0)),      # targets column (i32)
            ],
            out_specs=pl.BlockSpec((1, 1, 1), lambda i: (i, 0, 0)),
        ),
        compiler_params=pltpu.CompilerParams(
            dimension_semantics=("parallel",),        # independent tiles -> megacore sharding
            vmem_limit_bytes=64 * 1024 * 1024),
    )(x, wp, bp, tgt2)

    # Finalize in the wrapper: mean over the TRUE batch size, then + alpha * loss.
    denom = float(max(n, 1))
    ce = jnp.sum(partials) / denom
    return ce + alpha * jnp.asarray(loss, jnp.float32)


def _reference(loss, predicts, targets, weight, bias, alpha):
    # Mirror the kernel's bf16 MXU feed (f32 math thereafter).
    x = predicts.astype(jnp.bfloat16).astype(jnp.float32)
    w = weight.astype(jnp.bfloat16).astype(jnp.float32)
    logits = x @ w.T + bias
    logp = jax.nn.log_softmax(logits, axis=-1)
    ce = -jnp.mean(jnp.take_along_axis(logp, targets[:, None], axis=-1))
    return ce + alpha * loss


if __name__ == "__main__":
    # Small shapes consistent with the module (in_feat -> num_classes linear + CE),
    # sized to exercise a multi-tile grid, a ragged batch tail (300 % 256 != 0) and
    # class-axis padding (200 -> 256): N=300, D=64, C=200.
    N, D, C = 300, 64, 200
    ALPHA = 0.7

    key = jax.random.PRNGKey(0)
    k1, k2, k3, k4, k5 = jax.random.split(key, 5)

    predicts = jax.random.normal(k1, (N, D), jnp.float32)
    targets = jax.random.randint(k2, (N,), 0, C, jnp.int32)
    aux_loss = jax.random.uniform(k3, (), jnp.float32)

    # Deterministic nn.Linear(in_feat=D, num_classes=C) parameters.
    bound = 1.0 / (D ** 0.5)
    weight = jax.random.uniform(k4, (C, D), jnp.float32, -bound, bound)
    bias = jax.random.uniform(k5, (C,), jnp.float32, -bound, bound)

    out = multi_losses3_forward(aux_loss, predicts, targets, weight, bias, alpha=ALPHA)
    out = jax.block_until_ready(out)

    ref = _reference(aux_loss, predicts, targets, weight, bias, ALPHA)
    assert jnp.allclose(out, ref, rtol=2e-4, atol=2e-4), (out, ref)

    print("KERNEL_OK")
</pallas_src>

<mosaic_0001>
module attributes {stable_mosaic.version = 11 : i64} {
  func.func @_ce_partial_kernel(%arg0: i32, %arg1: memref<256x64xf32, #tpu.memory_space<vmem>>, %arg2: memref<256x64xbf16, #tpu.memory_space<vmem>>, %arg3: memref<1x256xf32, #tpu.memory_space<vmem>>, %arg4: memref<256x1xi32, #tpu.memory_space<vmem>>, %arg5: memref<1x1x1xf32, #tpu.memory_space<vmem>>) attributes {dimension_semantics = [#tpu.dimension_semantics<parallel>], iteration_bounds = array<i64: 2>, scalar_prefetch = 0 : i64, scratch_operands = 0 : i64, tpu.core_type = #tpu.core_type<tc>, window_params = [{transform_indices = @transform_0, window_bounds = array<i64: 256, 64>}, {pipeline_mode = #tpu.pipeline_mode<synchronous>, transform_indices = @transform_1, window_bounds = array<i64: 256, 64>}, {pipeline_mode = #tpu.pipeline_mode<synchronous>, transform_indices = @transform_2, window_bounds = array<i64: 1, 256>}, {transform_indices = @transform_3, window_bounds = array<i64: 256, 1>}, {transform_indices = @transform_4, window_bounds = array<i64: 1, 1, 1>}]} {
    %c0 = arith.constant 0 : index
    %c0_0 = arith.constant 0 : index
    %0 = vector.load %arg1[%c0, %c0_0] : memref<256x64xf32, #tpu.memory_space<vmem>>, vector<256x64xf32>
    %1 = arith.truncf %0 : vector<256x64xf32> to vector<256x64xbf16>
    %c0_1 = arith.constant 0 : index
    %c0_2 = arith.constant 0 : index
    %2 = vector.load %arg2[%c0_1, %c0_2] : memref<256x64xbf16, #tpu.memory_space<vmem>>, vector<256x64xbf16>
    %cst = arith.constant dense<0.000000e+00> : vector<256x256xf32>
    %3 = tpu.matmul %1, %2, %cst {dimension_numbers = #tpu.dot_dimension_numbers<[1], [1], [0], [0], [0, 0, 1, 0], [], []>} : vector<256x64xbf16>, vector<256x64xbf16>, vector<256x256xf32> -> vector<256x256xf32>
    %c0_3 = arith.constant 0 : index
    %c0_4 = arith.constant 0 : index
    %4 = vector.load %arg3[%c0_3, %c0_4] : memref<1x256xf32, #tpu.memory_space<vmem>>, vector<1x256xf32>
    %5 = vector.broadcast %4 : vector<1x256xf32> to vector<256x256xf32>
    %6 = arith.addf %3, %5 : vector<256x256xf32>
    %cst_5 = arith.constant dense<0xFF800000> : vector<256xf32>
    %7 = vector.multi_reduction <maximumf>, %6, %cst_5 [1] : vector<256x256xf32> to vector<256xf32>
    %8 = vector.shape_cast %7 : vector<256xf32> to vector<256x1xf32>
    %9 = vector.broadcast %8 : vector<256x1xf32> to vector<256x256xf32>
    %10 = arith.subf %6, %9 : vector<256x256xf32>
    %11 = math.exp %10 : vector<256x256xf32>
    %cst_6 = arith.constant dense<0.000000e+00> : vector<256xf32>
    %12 = vector.multi_reduction <add>, %11, %cst_6 [1] : vector<256x256xf32> to vector<256xf32>
    %13 = vector.shape_cast %12 : vector<256xf32> to vector<256x1xf32>
    %14 = math.log %13 : vector<256x1xf32>
    %15 = arith.addf %14, %8 : vector<256x1xf32>
    %c0_7 = arith.constant 0 : index
    %c0_8 = arith.constant 0 : index
    %16 = vector.load %arg4[%c0_7, %c0_8] : memref<256x1xi32, #tpu.memory_space<vmem>>, vector<256x1xi32>
    %17 = tpu.iota {dimensions = array<i32: 1>} : vector<256x256xi32>
    %18 = vector.broadcast %16 : vector<256x1xi32> to vector<256x256xi32>
    %19 = arith.cmpi eq, %17, %18 : vector<256x256xi32>
    %cst_9 = arith.constant 0.000000e+00 : f32
    %20 = vector.broadcast %cst_9 : f32 to vector<256x256xf32>
    %21 = arith.select %19, %6, %20 : vector<256x256xi1>, vector<256x256xf32>
    %cst_10 = arith.constant dense<0.000000e+00> : vector<256xf32>
    %22 = vector.multi_reduction <add>, %21, %cst_10 [1] : vector<256x256xf32> to vector<256xf32>
    %23 = vector.shape_cast %22 : vector<256xf32> to vector<256x1xf32>
    %24 = arith.subf %15, %23 : vector<256x1xf32>
    %c256_i32 = arith.constant 256 : i32
    %25 = arith.muli %arg0, %c256_i32 : i32
    %26 = tpu.iota {dimensions = array<i32: 0>} : vector<256x1xi32>
    %27 = vector.broadcast %25 : i32 to vector<256x1xi32>
    %28 = arith.addi %27, %26 : vector<256x1xi32>
    %c300_i32 = arith.constant 300 : i32
    %29 = vector.broadcast %c300_i32 : i32 to vector<256x1xi32>
    %30 = arith.cmpi slt, %28, %29 : vector<256x1xi32>
    %cst_11 = arith.constant 0.000000e+00 : f32
    %31 = vector.broadcast %cst_11 : f32 to vector<256x1xf32>
    %32 = arith.select %30, %24, %31 : vector<256x1xi1>, vector<256x1xf32>
    %33 = vector.shape_cast %32 : vector<256x1xf32> to vector<1x256x1xf32>
    %cst_12 = arith.constant dense<0.000000e+00> : vector<1xf32>
    %34 = vector.multi_reduction <add>, %33, %cst_12 [1, 2] : vector<1x256x1xf32> to vector<1xf32>
    %35 = vector.shape_cast %34 : vector<1xf32> to vector<1x1x1xf32>
    %36 = vector.extract %35[0, 0, 0] : f32 from vector<1x1x1xf32>
    %37 = vector.broadcast %36 : f32 to vector<1x1x1xf32>
    %c0_13 = arith.constant 0 : index
    %c0_14 = arith.constant 0 : index
    %c0_15 = arith.constant 0 : index
    %38 = vector.load %arg5[%c0_13, %c0_14, %c0_15] : memref<1x1x1xf32, #tpu.memory_space<vmem>>, vector<1x1x1xf32>
    tpu.vector_store %arg5[%c0_13, %c0_14, %c0_15], %37 {strides = array<i32>} : memref<1x1x1xf32, #tpu.memory_space<vmem>>, vector<1x1x1xf32>,
    return
  }
  func.func @transform_0(%arg0: i32) -> (i32, i32) {
    %c0_i32 = arith.constant 0 : i32
    %c0_i32_0 = arith.constant 0 : i32
    return %arg0, %c0_i32 : i32, i32
  }
  func.func @transform_1(%arg0: i32) -> (i32, i32) {
    %c0_i32 = arith.constant 0 : i32
    %c0_i32_0 = arith.constant 0 : i32
    %c0_i32_1 = arith.constant 0 : i32
    return %c0_i32, %c0_i32_0 : i32, i32
  }
  func.func @transform_2(%arg0: i32) -> (i32, i32) {
    %c0_i32 = arith.constant 0 : i32
    %c0_i32_0 = arith.constant 0 : i32
    %c0_i32_1 = arith.constant 0 : i32
    return %c0_i32, %c0_i32_0 : i32, i32
  }
  func.func @transform_3(%arg0: i32) -> (i32, i32) {
    %c0_i32 = arith.constant 0 : i32
    %c0_i32_0 = arith.constant 0 : i32
    return %arg0, %c0_i32 : i32, i32
  }
  func.func @transform_4(%arg0: i32) -> (i32, i32, i32) {
    %c0_i32 = arith.constant 0 : i32
    %c0_i32_0 = arith.constant 0 : i32
    %c0_i32_1 = arith.constant 0 : i32
    return %arg0, %c0_i32, %c0_i32_0 : i32, i32, i32
  }
}

</mosaic_0001>

<bundles_post_ra>
// kernel: multi_losses3_forward.1
= control target key start
LH: loop header
LB: loop body
LE: loop exit
PB: predicated region body
PF: predicated region fallthrough
CT: control target
= control target key end

     0   :  { %s3921_s0 = inlined_call_operand.hbm [shape: f32[512,64], index: 0, kind: input, shape index: {}]   ;;  %s3922_s1 = inlined_call_operand.hbm [shape: bf16[256,64], index: 1, kind: input, shape index: {}]   ;;  %s3923_s2 = inlined_call_operand.hbm [shape: f32[1,256], index: 2, kind: input, shape index: {}]   ;;  %s3924_s3 = inlined_call_operand.hbm [shape: s32[512,1], index: 3, kind: input, shape index: {}]   ;;  %s3925_s4 = inlined_call_operand.hbm [shape: f32[2,1,1], index: 4, kind: output, shape index: {}]  }
   0x1   :  { %4021 = sst [smem:[#allocation68_spill]] %s3921_s0 }
   0x2   :  { %9 = vsyncpa [#allocation3], 0 }
   0x3   :  { %11 = vsyncpa [#allocation3 + $0x1], 0 }
   0x4   :  { %12 = vsyncpa [#allocation6], 0 }
   0x5   :  { %13 = vsyncpa [#allocation9], 0 }
   0x6   :  { %15 = vsyncpa [#allocation9 + $0x1], 0 }
   0x7   :  { %16 = vsyncpa [#allocation4], 0 }
   0x8   :  { %18 = vsyncpa [#allocation4 + $0x1], 0  ;;  %s2592_s15 = smov 0   ;;  %s2594_s16 = smov 0  }
   0x9   :  { %s2596_s17 = smov 0   ;;  %s2598_s18 = smov 0  }
   0xa LB: > { %s2613_s19 = sadd.s32 4294967295, %s2555_s18   ;;  %s1942_s20 = sadd.s32 4294967294, %s2555_s18   ;;  %s2555_s18 = sphi %s2598_s18, %s4152_s18   ;;  %s2551_s17 = sphi %s2596_s17, %s4151_s17   ;;  %s2547_s16 = sphi %s2594_s16, %s4150_s16   ;;  %s2543_s15 = sphi %s2592_s15, %s4149_s15  }
   0xb   : > { %p44_p0 = scmp.ne.s32.totalorder %s2547_s16, %s2543_s15  ;;  %p3926_p1 = scmp.eq.s32.totalorder %s2613_s19, 0 }
   0xc   : > { %p142_p3 = scmp.eq.s32.totalorder %s1942_s20, 1  ;;  %p1943_p5 = scmp.ge.s32.totalorder %s2555_s18, 1 }
   0xd   : > { %p2622_p4 = por %p3926_p1, %p44_p0  ;;  %p149_p7 = scmp.lt.s32.totalorder %s2555_s18, 3 }
   0xe   : > { %p2627_p6 = por %p142_p3, %p44_p0  ;;  %s2557_s24 = smov [#allocation5]  }
   0xf   : > { %s4022_s21 = scalar_select %p2622_p4, 1, 0 }
  0x10   : > { %s4023_s22 = scalar_select %p2627_p6, 1, 0 }
  0x11   : > { %p2632_p8 = pnand %p1943_p5, %p149_p7  ;;  %s161_s25 = sshll.u32 %s2557_s24, 4  ;;  %s2636_s25 = int_to_ptr.vmem [resolvable:$true] %s161_s25 }
  0x12   : > { %s2558_s27 = smov [#allocation7]   ;;  %s2365_s5 = scalar_lea.hbm %s3922_s1, 2048 }
  0x13   : > { %p2092_p9 = pneg %p2632_p8  ;;  %s175_s28 = sshll.u32 %s2558_s27, 4  ;;  %s2647_s28 = int_to_ptr.vmem [resolvable:$true] %s175_s28 }
  0x14   : > { %p2366_p12 = scmp.ne.s32.totalorder %s3922_s1, %s2365_s5  ;;  %p2372_p5 = scmp.lt.u32.totalorder %s2365_s5, %s3922_s1 }
  0x15   : > { %p2643_p11 = pnand %p2092_p9, %p3926_p1 }
  0x17   : > { %p2367_p13 = pneg %p2643_p11 }
  0x19   : > { %p2368_p0 = pnand %p2367_p13, %p2366_p12 }
  0x1b   : > { %p2369_p3 = pneg %p2368_p0 }
  0x1d   : > { %p2374_p7 = pnand %p2372_p5, %p2369_p3 }
  0x1f   : > { %2377 = shalt.err (!%p2374_p7)
}
  0x20   : > { %s2378_s10 = scalar_lea.vmem %s2636_s25, 2048  ;;  %p2386_p2 = scmp.lt.s32.totalorder %s2636_s25, %s2636_s25 }
  0x21   : > { %p2379_p9 = scmp.ne.s32.totalorder %s2636_s25, %s2378_s10  ;;  %p2387_p12 = scmp.lt.s32.totalorder %s2378_s10, %s2378_s10 }
  0x23   : > { %p2381_p10 = pnand %p2379_p9, %p2367_p13  ;;  %p2388_p0 = por %p2387_p12, %p2386_p2 }
  0x25   : > { %p2382_p1 = pneg %p2381_p10 }
  0x27   : > { %p2389_p6 = pnand %p2388_p0, %p2382_p1 }
  0x29   : > { %2392 = shalt.err (!%p2389_p6)
}
  0x2a   : > { %s2559_s11 = smov 64   ;;  %s2560_s12 = smov 4  }
  0x2b   : > { %2095 = dma.hbm_to_vmem [thread:$0]  (!%p2643_p11), %s3922_s1, 2048, %s2636_s25, [#allocation6], %s2559_s11, %s2559_s11, %s2560_s12  }
  0x2c   : > { %s2393_s27 = scalar_lea.hbm %s3923_s2, 32 }
  0x2d   : > { %p2394_p2 = scmp.ne.s32.totalorder %s3923_s2, %s2393_s27  ;;  %p2400_p10 = scmp.lt.u32.totalorder %s2393_s27, %s3923_s2 }
  0x2f   : > { %p2396_p1 = pnand %p2394_p2, %p2367_p13 }
  0x31   : > { %p2397_p6 = pneg %p2396_p1 }
  0x33   : > { %p2402_p3 = pnand %p2400_p10, %p2397_p6 }
  0x35   : > { %2405 = shalt.err (!%p2402_p3)
}
  0x36   : > { %s2406_s25 = scalar_lea.vmem %s2647_s28, 32  ;;  %p2414_p12 = scmp.lt.s32.totalorder %s2647_s28, %s2647_s28 }
  0x37   : > { %p2407_p5 = scmp.ne.s32.totalorder %s2647_s28, %s2406_s25  ;;  %p2415_p0 = scmp.lt.s32.totalorder %s2406_s25, %s2406_s25 }
  0x39   : > { %p2409_p7 = pnand %p2407_p5, %p2367_p13  ;;  %p2416_p2 = por %p2415_p0, %p2414_p12 }
  0x3b   : > { %p2410_p9 = pneg %p2409_p7 }
  0x3d   : > { %p2417_p1 = pnand %p2416_p2, %p2410_p9 }
  0x3f   : > { %2420 = shalt.err (!%p2417_p1)
}
  0x40   : > { %2098 = dma.hbm_to_vmem [thread:$0]  (!%p2643_p11), %s3923_s2, 32, %s2647_s28, [#allocation6]  }
  0x41   : > { %s2702_s9 = sadd.s32 1, %s2555_s18   ;;  %s31_s26 = sadd.s32 1, %s2551_s17 }
  0x42   : > { %s28_s10 = ssub.s32 %s2555_s18, %s2702_s9  ;;  %p38_p13 = scmp.ne.s32.totalorder %s2551_s17, %s2547_s16 }
  0x43   : > { %p29_p6 = scmp.eq.s32.totalorder %s28_s10, 0  ;;  %p39_p10 = scmp.eq.s32.totalorder %s2555_s18, 0 }
  0x44   : > { %p4026_p3 = scmp.eq.s32.totalorder %s2613_s19, 1  ;;  %p2112_p7 = scmp.lt.s32.totalorder %s2555_s18, 2 }
  0x45   : > { %s2718_s12 = scalar_select %p29_p6, %s2551_s17, %s31_s26  }
  0x46   : > { %p2712_p5 = por %p4026_p3, %p38_p13  ;;  %p40_p9 = por %p39_p10, %p38_p13 }
  0x47   : > { %s2721_s13 = sand.u32 1, %s2551_s17   ;;  %s1994_s14 = sshll.u32 %s2555_s18, 12 }
  0x48   : > { %s4027_s11 = scalar_select %p2712_p5, 1, 0 }
  0x49   : > { %s1947_s28 = sshll.u32 %s2721_s13, 8  ;;  %s4028_s0 = sld [smem:[#allocation68_spill]] }
  0x4a   : > { %s190_s29 = scalar_lea.vmem [#allocation2], %s1947_s28  ;;  %p2736_p11 = pnand %p2112_p7, %p40_p9 }
  0x4b   : > { %s197_s30 = sshll.u32 %s190_s29, 4  ;;  %s187_s6 = scalar_lea.sflag [#allocation3], %s2721_s13  ;;  %s2734_s30 = int_to_ptr.vmem [resolvable:$true] %s197_s30 }
  0x4c   : > { %p2423_p0 = pneg %p2736_p11 }
  0x4f   : > { %s2730_s27 = scalar_lea.hbm %s4028_s0, %s1994_s14  ;;  %s2426_s26 = scalar_lea.hbm %s4028_s0, 8192 }
  0x50   : > { %s2421_s25 = scalar_lea.hbm %s2730_s27, 4096  ;;  %p2427_p13 = scmp.lt.u32.totalorder %s2730_s27, %s4028_s0 }
  0x51   : > { %p2422_p12 = scmp.ne.s32.totalorder %s2730_s27, %s2421_s25  ;;  %p2428_p6 = scmp.lt.u32.totalorder %s2426_s26, %s2421_s25 }
  0x52   : > { %p2430_p3 = scmp.lt.u32.totalorder %s2421_s25, %s2730_s27 }
  0x53   : > { %p2424_p2 = pnand %p2423_p0, %p2422_p12  ;;  %p2429_p10 = por %p2428_p6, %p2427_p13 }
  0x55   : > { %p2425_p1 = pneg %p2424_p2  ;;  %p2431_p7 = por %p2430_p3, %p2429_p10 }
  0x57   : > { %p2432_p9 = pnand %p2431_p7, %p2425_p1 }
  0x59   : > { %2435 = shalt.err (!%p2432_p9)
}
  0x5a   : > { %s2436_s24 = scalar_lea.vmem %s2734_s30, 4096  ;;  %s2561_s29 = smov [#allocation2]  }
  0x5b   : > { %p2437_p12 = scmp.ne.s32.totalorder %s2734_s30, %s2436_s24  ;;  %s2441_s7 = sshll.u32 %s2561_s29, 4  ;;  %s2442_s7 = int_to_ptr.vmem [resolvable:$false] %s2441_s7 }
  0x5c   : > { %s2443_s8 = scalar_lea.vmem %s2442_s7, 8192  ;;  %p2444_p4 = scmp.lt.s32.totalorder %s2734_s30, %s2442_s7 }
  0x5d   : > { %p2439_p2 = pnand %p2437_p12, %p2423_p0  ;;  %p2445_p13 = scmp.lt.s32.totalorder %s2443_s8, %s2436_s24 }
  0x5f   : > { %p2440_p5 = pneg %p2439_p2  ;;  %p2446_p6 = por %p2445_p13, %p2444_p4 }
  0x61   : > { %p2447_p10 = pnand %p2446_p6, %p2440_p5 }
  0x63   : > { %2450 = shalt.err (!%p2447_p10)
}
  0x64   : > { %s2562_s25 = smov 128   ;;  %s2563_s26 = smov 8  }
  0x65   : > { %2102 = dma.hbm_to_vmem [thread:$0]  (!%p2736_p11), %s2730_s27, 4096, %s2734_s30, %s187_s6, %s2562_s25, %s2562_s25, %s2563_s26  }
  0x66   : > { %s2776_s24 = scalar_lea.hbm %s3924_s3, %s1994_s14  ;;  %s211_s29 = scalar_lea.vmem [#allocation8], %s1947_s28 }
  0x67   : > { %s218_s7 = sshll.u32 %s211_s29, 4  ;;  %s208_s8 = scalar_lea.sflag [#allocation9], %s2721_s13  ;;  %s2780_s7 = int_to_ptr.vmem [resolvable:$true] %s218_s7 }
  0x68   : > { %s2451_s0 = scalar_lea.hbm %s2776_s24, 4096  ;;  %s2456_s14 = scalar_lea.hbm %s3924_s3, 8192 }
  0x69   : > { %p2452_p4 = scmp.ne.s32.totalorder %s2776_s24, %s2451_s0  ;;  %p2457_p3 = scmp.lt.u32.totalorder %s2776_s24, %s3924_s3 }
  0x6a   : > { %p2458_p7 = scmp.lt.u32.totalorder %s2456_s14, %s2451_s0  ;;  %p2460_p12 = scmp.lt.u32.totalorder %s2451_s0, %s2776_s24 }
  0x6b   : > { %p2454_p5 = pnand %p2452_p4, %p2423_p0 }
  0x6c   : > { %p2459_p9 = por %p2458_p7, %p2457_p3 }
  0x6d   : > { %p2455_p1 = pneg %p2454_p5 }
  0x6e   : > { %p2461_p2 = por %p2460_p12, %p2459_p9 }
  0x70   : > { %p2462_p13 = pnand %p2461_p2, %p2455_p1 }
  0x72   : > { %2465 = shalt.err (!%p2462_p13)
}
  0x73   : > { %s2466_s28 = scalar_lea.vmem %s2780_s7, 4096  ;;  %s2564_s20 = smov [#allocation8]  }
  0x74   : > { %p2467_p6 = scmp.ne.s32.totalorder %s2780_s7, %s2466_s28  ;;  %s2471_s29 = sshll.u32 %s2564_s20, 4  ;;  %s2472_s29 = int_to_ptr.vmem [resolvable:$false] %s2471_s29 }
  0x75   : > { %s2473_s27 = scalar_lea.vmem %s2472_s29, 8192  ;;  %p2474_p5 = scmp.lt.s32.totalorder %s2780_s7, %s2472_s29 }
  0x76   : > { %p2469_p10 = pnand %p2467_p6, %p2423_p0  ;;  %p2475_p3 = scmp.lt.s32.totalorder %s2473_s27, %s2466_s28 }
  0x78   : > { %p2470_p4 = pneg %p2469_p10  ;;  %p2476_p7 = por %p2475_p3, %p2474_p5 }
  0x7a   : > { %p2477_p9 = pnand %p2476_p7, %p2470_p4 }
  0x7c   : > { %2480 = shalt.err (!%p2477_p9)
}
  0x7d   : > { %2105 = dma.hbm_to_vmem [thread:$0]  (!%p2736_p11), %s2776_s24, 4096, %s2780_s7, %s208_s8, %s2562_s25, %s2562_s25, %s2563_s26  }
  0x7e   : > { %230 = sbr.rel (%p2632_p8) target bundleno = 1179 (0x49b), region = 36 }
  0x85   : > { %s2814_s0 = sand.u32 1, %s2547_s16   ;;  %p4030_p0 = scmp.ne.s32.totalorder %s4022_s21, 0 }
  0x86   : > { %s1954_s30 = sshll.u32 %s2814_s0, 8  ;;  %s233_s14 = scalar_lea.sflag [#allocation3], %s2814_s0 }
  0x87   : > { %s2818_s5 = scalar_lea.vmem [#allocation2], %s1954_s30 }
  0x88   : > { %2526 = dma.done.wait (%p4030_p0), %s233_s14, 4096  }
  0x89   : > { %2528 = vsyncadd (%p4030_p0), %s233_s14, 4294963200  ;;  %p4031_p11 = scmp.eq.s32.totalorder %s2613_s19, 0 }
  0x8b   : > { %2530 = dma.done.wait (%p4031_p11), [#allocation6], 2080   ;;  %p4032_p8 = pmov %p4031_p11 }
  0x8c   : > { %s250_s23 = scalar_lea.sflag [#allocation9], %s2814_s0  ;;  %s2829_s13 = scalar_lea.vmem [#allocation8], %s1954_s30 }
  0x8d   : > { %2532 = vsyncadd (%p4032_p8), [#allocation6], 4294965216 }
  0x8e   : > { %2534 = dma.done.wait (%p4030_p0), %s250_s23, 4096  }
  0x8f   : > { %2536 = vsyncadd (%p4030_p0), %s250_s23, 4294963200  ;;  %v2565_v0 = vmov 0   ;;  %vm457_vm0 = vcmask 523264   ;;  %v2157_v1 = vld [vmem:[#allocation5 + $0x40] sm:$0xff]   ;;  %v2159_v3 = vld [vmem:[#allocation5 + $0x48] sm:$0xff]   ;;  %s1990_s21 = sshll.u32 %s2613_s19, 8 }
  0x90   : > { %2155 = vset.pattern.permute.xlu1 %v2565_v0  ;;  %2156 = vset.pattern.permute.xlu0 %v2565_v0  ;;  %v2158_v2 = vld [vmem:[#allocation5] sm:$0xff]   ;;  %v2160_v5 = vld [vmem:[#allocation5 + $0x8] sm:$0xff]   ;;  %v2161_v7 = vld [vmem:[#allocation5 + $0x50] sm:$0xff]   ;;  %s1991_s25 = sshll.u32 %s2613_s19, 4  ;;  %s281_s26 = scalar_lea.vmem [#allocation10], %s2814_s0 }
  0x91   : > { %2060 = vmatprep.subr.msk.bf16.mxu0 %vm457_vm0, %v2157_v1  ;;  %2061 = vmatprep.subr.msk.bf16.mxu1 %vm457_vm0, %v2157_v1  ;;  %v507_v4 = vsel %vm457_vm0, %v2158_v2, 0  ;;  %v510_v6 = vsel %vm457_vm0, %v2160_v5, 0  ;;  %v2162_v8 = vld [vmem:[#allocation5 + $0x10] sm:$0xff]   ;;  %v285_v9 = vld [vmem:[%s2818_s5] sm:$0xff]  ;;  %v286_v10 = vld [vmem:[%s2818_s5 + $0x8] sm:$0xff]  ;;  %s1834_s24 = sshll.u32 %s281_s26, 4  ;;  %s3877_s6 = scalar_lea.hbm %s3925_s4, %s1991_s25  ;;  %s3879_s24 = int_to_ptr.vmem [resolvable:$true] %s1834_s24 }
  0x92   : > { %1997 = vmatpush3.bf16.xpose.msra.mxu0 %v507_v4  ;;  %2052 = vmatpush3.bf16.xpose.msra.mxu1 %v507_v4  ;;  %v301_v11 = vld [vmem:[%s2818_s5 + $0x80] sm:$0xff]  ;;  %v513_v12 = vsel %vm457_vm0, %v2162_v8, 0  ;;  %v2163_v13 = vld [vmem:[#allocation5 + $0x58] sm:$0xff]   ;;  %v2847_v14 = vpack.c.bf16 %v286_v10, %v285_v9  ;;  %v302_v15 = vld [vmem:[%s2818_s5 + $0x88] sm:$0xff]  ;;  %s1822_s28 = scalar_lea.sflag [#allocation4], %s2814_s0  ;;  %s2481_s20 = scalar_lea.vmem %s3879_s24, 16 }
  0x93   : > { %2062 = vmatprep.subr.msk.bf16.mxu0 %vm457_vm0, %v2159_v3  ;;  %2063 = vmatprep.subr.msk.bf16.mxu1 %vm457_vm0, %v2159_v3  ;;  %v2850_v16 = vpack.c.bf16 %v302_v15, %v301_v11  ;;  %v2164_v17 = vld [vmem:[#allocation5 + $0x18] sm:$0xff]   ;;  %v2165_v19 = vld [vmem:[#allocation5 + $0x60] sm:$0xff]   ;;  %v1228_v21 = vld [vmem:[%s2829_s13 + $0x8] sm:$0xff]  ;;  %p2482_p1 = scmp.ne.s32.totalorder %s3879_s24, %s2481_s20  ;;  %p4146_p12 = scmp.ne.s32.totalorder %s4027_s11, 0 }
  0x94   : > { %2012 = vmatprep.mubr.msk.bf16.mxu0 %vm457_vm0, %v2847_v14  ;;  %v516_v18 = vsel %vm457_vm0, %v2164_v17, 0  ;;  %v1227_v20 = vld [vmem:[%s2829_s13] sm:$0xff]  ;;  %1266 = vperm.xlu0 %2156, %v1228_v21   ;;  %v1229_v22 = vld [vmem:[%s2829_s13 + $0x10] sm:$0xff]  ;;  %v1230_v23 = vld [vmem:[%s2829_s13 + $0x18] sm:$0xff]  ;;  %s2566_s19 = smov [#allocation10]  }
  0x95   : > { %2028 = vmatprep.mubr.msk.bf16.mxu1 %vm457_vm0, %v2850_v16  ;;  %1263 = vperm.xlu1 %2155, %v1227_v20   ;;  %v2166_v24 = vld [vmem:[#allocation5 + $0x20] sm:$0xff]   ;;  %v1232_v26 = vld [vmem:[%s2829_s13 + $0x28] sm:$0xff]  ;;  %v1233_v29 = vld [vmem:[%s2829_s13 + $0x30] sm:$0xff]  ;;  %v3929_v20 = vlaneseq  ;;  %p2483_p2 = pnand %p2482_p1, %p4146_p12  ;;  %s2485_s29 = sshll.u32 %s2566_s19, 4  ;;  %s2486_s29 = int_to_ptr.vmem [resolvable:$false] %s2485_s29 }
  0x96   : > { %v1231_v25 = vld [vmem:[%s2829_s13 + $0x20] sm:$0xff]  ;;  %v519_v27 = vsel %vm457_vm0, %v2166_v24, 0  ;;  %v1234_v30 = vld [vmem:[%s2829_s13 + $0x38] sm:$0xff]  ;;  %v1236_v33 = vld [vmem:[%s2829_s13 + $0x48] sm:$0xff]  ;;  %s2487_s27 = scalar_lea.vmem %s2486_s29, 32  ;;  %p2488_p6 = scmp.lt.s32.totalorder %s3879_s24, %s2486_s29 }
  0x97   : > { %v2167_v28 = vld [vmem:[#allocation5 + $0x68] sm:$0xff]   ;;  %v2169_v35 = vld [vmem:[#allocation5 + $0x70] sm:$0xff]   ;;  %v2171_v39 = vld [vmem:[#allocation5 + $0x78] sm:$0xff]   ;;  %v2943_v21 = vshrl.u32 %v3929_v20, 7  ;;  %p2484_p13 = pneg %p2483_p2  ;;  %p2489_p10 = scmp.lt.s32.totalorder %s2487_s27, %s2481_s20 }
  0x98   : > { %1269 = vperm.xlu0 %2156, %v1229_v22   ;;  %v2168_v31 = vld [vmem:[#allocation5 + $0x28] sm:$0xff]   ;;  %v1237_v36 = vld [vmem:[%s2829_s13 + $0x50] sm:$0xff]  ;;  %v289_v48 = vld [vmem:[%s2818_s5 + $0x20] sm:$0xff] }
  0x99   : > { %1272 = vperm.xlu1 %2155, %v1230_v23   ;;  %v1235_v32 = vld [vmem:[%s2829_s13 + $0x40] sm:$0xff]  ;;  %v522_v34 = vsel %vm457_vm0, %v2168_v31, 0  ;;  %v2170_v37 = vld [vmem:[#allocation5 + $0x30] sm:$0xff]   ;;  %v2172_v40 = vld [vmem:[#allocation5 + $0x38] sm:$0xff]   ;;  %4033 = vst [vmem:[#allocation15_spill] sm:$0xff] %v2943_v21  ;;  %v369_v22 = vsub.s32 0, %v2943_v21  ;;  %p2490_p4 = por %p2489_p10, %p2488_p6 }
  0x9a   : > { %1999 = vmatpush3.bf16.xpose.msra.mxu0 %v510_v6  ;;  %2053 = vmatpush3.bf16.xpose.msra.mxu1 %v510_v6  ;;  %v525_v38 = vsel %vm457_vm0, %v2170_v37, 0  ;;  %v528_v41 = vsel %vm457_vm0, %v2172_v40, 0  ;;  %v287_v42 = vld [vmem:[%s2818_s5 + $0x10] sm:$0xff]  ;;  %v288_v43 = vld [vmem:[%s2818_s5 + $0x18] sm:$0xff]  ;;  %v290_v49 = vld [vmem:[%s2818_s5 + $0x28] sm:$0xff]  ;;  %v373_v24 = vsub.s32 1, %v2943_v21 }
  0x9b   : > { %2064 = vmatprep.subr.msk.bf16.mxu0 %vm457_vm0, %v2161_v7  ;;  %2065 = vmatprep.subr.msk.bf16.mxu1 %vm457_vm0, %v2161_v7  ;;  %v303_v44 = vld [vmem:[%s2818_s5 + $0x90] sm:$0xff]  ;;  %v304_v45 = vld [vmem:[%s2818_s5 + $0x98] sm:$0xff]  ;;  %v318_v46 = vpack.c.bf16 %v288_v43, %v287_v42  ;;  %v305_v50 = vld [vmem:[%s2818_s5 + $0xa0] sm:$0xff]  ;;  %v319_v52 = vpack.c.bf16 %v290_v49, %v289_v48  ;;  %p2491_p5 = pnand %p2490_p4, %p2484_p13 }
  0x9c   : > { %1275 = vperm.xlu0 %2156, %v1231_v25   ;;  %v326_v47 = vpack.c.bf16 %v304_v45, %v303_v44  ;;  %v306_v51 = vld [vmem:[%s2818_s5 + $0xa8] sm:$0xff]  ;;  %v291_v54 = vld [vmem:[%s2818_s5 + $0x30] sm:$0xff]  ;;  %v292_v55 = vld [vmem:[%s2818_s5 + $0x38] sm:$0xff] }
  0x9d   : > { %1278 = vperm.xlu1 %2155, %v1232_v26   ;;  %v327_v53 = vpack.c.bf16 %v306_v51, %v305_v50  ;;  %v307_v56 = vld [vmem:[%s2818_s5 + $0xb0] sm:$0xff]  ;;  %v308_v57 = vld [vmem:[%s2818_s5 + $0xb8] sm:$0xff]  ;;  %v320_v58 = vpack.c.bf16 %v292_v55, %v291_v54  ;;  %v293_v60 = vld [vmem:[%s2818_s5 + $0x40] sm:$0xff] }
  0x9e   : > { %v328_v59 = vpack.c.bf16 %v308_v57, %v307_v56  ;;  %v294_v61 = vld [vmem:[%s2818_s5 + $0x48] sm:$0xff]  ;;  %v309_v62 = vld [vmem:[%s2818_s5 + $0xc0] sm:$0xff]  ;;  %v295_v2 = vld [vmem:[%s2818_s5 + $0x50] sm:$0xff] }
  0x9f   : > { %v310_v63 = vld [vmem:[%s2818_s5 + $0xc8] sm:$0xff]  ;;  %v321_v0 = vpack.c.bf16 %v294_v61, %v293_v60  ;;  %v296_v3 = vld [vmem:[%s2818_s5 + $0x58] sm:$0xff]  ;;  %v311_v4 = vld [vmem:[%s2818_s5 + $0xd0] sm:$0xff] }
  0xa0   : > { %1281 = vperm.xlu0 %2156, %v1233_v29   ;;  %v329_v1 = vpack.c.bf16 %v310_v63, %v309_v62  ;;  %v312_v5 = vld [vmem:[%s2818_s5 + $0xd8] sm:$0xff]  ;;  %v322_v6 = vpack.c.bf16 %v296_v3, %v295_v2  ;;  %v297_v8 = vld [vmem:[%s2818_s5 + $0x60] sm:$0xff]  ;;  %v298_v9 = vld [vmem:[%s2818_s5 + $0x68] sm:$0xff] }
  0xa1   : > { %1284 = vperm.xlu1 %2155, %v1234_v30   ;;  %v330_v7 = vpack.c.bf16 %v312_v5, %v311_v4  ;;  %v313_v10 = vld [vmem:[%s2818_s5 + $0xe0] sm:$0xff]  ;;  %v314_v11 = vld [vmem:[%s2818_s5 + $0xe8] sm:$0xff]  ;;  %v300_v15 = vld [vmem:[%s2818_s5 + $0x78] sm:$0xff] }
  0xa2   : > { %2001 = vmatpush3.bf16.xpose.msra.mxu0 %v513_v12  ;;  %2054 = vmatpush3.bf16.xpose.msra.mxu1 %v513_v12  ;;  %v323_v12 = vpack.c.bf16 %v298_v9, %v297_v8  ;;  %v316_v17 = vld [vmem:[%s2818_s5 + $0xf8] sm:$0xff]  ;;  %v365_v23 = vld [vmem:[#allocation7] sm:$0x3] }
  0xa3   : > { %2066 = vmatprep.subr.msk.bf16.mxu0 %vm457_vm0, %v2163_v13  ;;  %2067 = vmatprep.subr.msk.bf16.mxu1 %vm457_vm0, %v2163_v13  ;;  %v331_v13 = vpack.c.bf16 %v314_v11, %v313_v10  ;;  %v2947_v25 = vrot.slane %v365_v23, %v369_v22  ;;  %v2949_v26 = vrot.slane %v365_v23, %v373_v24 }
  0xa4   : > { %1287 = vperm.xlu0 %2156, %v1235_v32  }
  0xa5   : > { %1290 = vperm.xlu1 %2155, %v1236_v33  }
  0xa8   : > { %1293 = vperm.xlu0 %2156, %v1237_v36  }
  0xaa   : > { %2003 = vmatpush3.bf16.xpose.msra.mxu0 %v516_v18  ;;  %2055 = vmatpush3.bf16.xpose.msra.mxu1 %v516_v18 }
  0xab   : > { %2068 = vmatprep.subr.msk.bf16.mxu0 %vm457_vm0, %v2165_v19  ;;  %2069 = vmatprep.subr.msk.bf16.mxu1 %vm457_vm0, %v2165_v19 }
  0xb2   : > { %2005 = vmatpush3.bf16.xpose.msra.mxu0 %v519_v27  ;;  %2056 = vmatpush3.bf16.xpose.msra.mxu1 %v519_v27 }
  0xb3   : > { %2070 = vmatprep.subr.msk.bf16.mxu0 %vm457_vm0, %v2167_v28  ;;  %2071 = vmatprep.subr.msk.bf16.mxu1 %vm457_vm0, %v2167_v28 }
  0xba   : > { %2007 = vmatpush3.bf16.xpose.msra.mxu0 %v522_v34  ;;  %2057 = vmatpush3.bf16.xpose.msra.mxu1 %v522_v34 }
  0xbb   : > { %2072 = vmatprep.subr.msk.bf16.mxu0 %vm457_vm0, %v2169_v35  ;;  %2073 = vmatprep.subr.msk.bf16.mxu1 %vm457_vm0, %v2169_v35 }
  0xc2   : > { %2009 = vmatpush3.bf16.xpose.msra.mxu0 %v525_v38  ;;  %2058 = vmatpush3.bf16.xpose.msra.mxu1 %v525_v38 }
  0xc3   : > { %2074 = vmatprep.subr.msk.bf16.mxu0 %vm457_vm0, %v2171_v39  ;;  %2075 = vmatprep.subr.msk.bf16.mxu1 %vm457_vm0, %v2171_v39 }
  0xca   : > { %2011 = vmatpush3.bf16.xpose.msra.mxu0 %v528_v41  ;;  %2059 = vmatpush3.bf16.xpose.msra.mxu1 %v528_v41 }
  0xd1   : > { %2013 = vmatmul.mubr.msk.bf16.vlgmr.msra.gmra.mrb[0].mxu0 %vm457_vm0, %v2847_v14  ;;  %2029 = vmatmul.mubr.msk.bf16.vlgmr.msra.gmra.mrb[0].mxu1 %vm457_vm0, %v2850_v16  ;;  %v299_v14 = vld [vmem:[%s2818_s5 + $0x70] sm:$0xff] }
  0xd2   : > { %2014 = vmatprep.mubr.msk.bf16.mxu0 %vm457_vm0, %v318_v46  ;;  %2030 = vmatprep.mubr.msk.bf16.mxu1 %vm457_vm0, %v326_v47  ;;  %v315_v16 = vld [vmem:[%s2818_s5 + $0xf0] sm:$0xff]  ;;  %v324_v18 = vpack.c.bf16 %v300_v15, %v299_v14 }
  0xd3   : > { %v332_v19 = vpack.c.bf16 %v316_v17, %v315_v16 }
  0xd9   : > { %2015 = vmatmul.mubr.msk.bf16.gmra.mrb[4].mxu0 %vm457_vm0, %v318_v46  ;;  %2031 = vmatmul.mubr.msk.bf16.gmra.mrb[4].mxu1 %vm457_vm0, %v326_v47 }
  0xda   : > { %2016 = vmatprep.mubr.msk.bf16.mxu0 %vm457_vm0, %v319_v52  ;;  %2032 = vmatprep.mubr.msk.bf16.mxu1 %vm457_vm0, %v327_v53 }
  0xe1   : > { %2017 = vmatmul.mubr.msk.bf16.gmra.mrb[8].mxu0 %vm457_vm0, %v319_v52  ;;  %2033 = vmatmul.mubr.msk.bf16.gmra.mrb[8].mxu1 %vm457_vm0, %v327_v53 }
  0xe2   : > { %2018 = vmatprep.mubr.msk.bf16.mxu0 %vm457_vm0, %v320_v58  ;;  %2034 = vmatprep.mubr.msk.bf16.mxu1 %vm457_vm0, %v328_v59 }
  0xe9   : > { %2019 = vmatmul.mubr.msk.bf16.gmra.mrb[12].mxu0 %vm457_vm0, %v320_v58  ;;  %2035 = vmatmul.mubr.msk.bf16.gmra.mrb[12].mxu1 %vm457_vm0, %v328_v59 }
  0xea   : > { %2020 = vmatprep.mubr.msk.bf16.mxu0 %vm457_vm0, %v321_v0  ;;  %2036 = vmatprep.mubr.msk.bf16.mxu1 %vm457_vm0, %v329_v1 }
  0xf1   : > { %2021 = vmatmul.mubr.msk.bf16.gmra.mrb[16].mxu0 %vm457_vm0, %v321_v0  ;;  %2037 = vmatmul.mubr.msk.bf16.gmra.mrb[16].mxu1 %vm457_vm0, %v329_v1 }
  0xf2   : > { %2022 = vmatprep.mubr.msk.bf16.mxu0 %vm457_vm0, %v322_v6  ;;  %2038 = vmatprep.mubr.msk.bf16.mxu1 %vm457_vm0, %v330_v7 }
  0xf9   : > { %2023 = vmatmul.mubr.msk.bf16.gmra.mrb[20].mxu0 %vm457_vm0, %v322_v6  ;;  %2039 = vmatmul.mubr.msk.bf16.gmra.mrb[20].mxu1 %vm457_vm0, %v330_v7 }
  0xfa   : > { %2024 = vmatprep.mubr.msk.bf16.mxu0 %vm457_vm0, %v323_v12  ;;  %2040 = vmatprep.mubr.msk.bf16.mxu1 %vm457_vm0, %v331_v13 }
 0x101   : > { %2025 = vmatmul.mubr.msk.bf16.gmra.mrb[24].mxu0 %vm457_vm0, %v323_v12  ;;  %2041 = vmatmul.mubr.msk.bf16.gmra.mrb[24].mxu1 %vm457_vm0, %v331_v13 }
 0x102   : > { %2026 = vmatprep.mubr.msk.bf16.mxu0 %vm457_vm0, %v324_v18  ;;  %2042 = vmatprep.mubr.msk.bf16.mxu1 %vm457_vm0, %v332_v19 }
 0x109   : > { %2027 = vmatmul.mubr.msk.bf16.gmra.mrb[28].mxu0 %vm457_vm0, %v324_v18  ;;  %2043 = vmatmul.mubr.msk.bf16.gmra.mrb[28].mxu1 %vm457_vm0, %v332_v19 }
 0x1a4   : > { %v588_v27 = vpop.f32.mrb[0].mxu0  ;;  %v668_v28 = vpop.f32.mrb[0].mxu1 }
 0x1a5   : > { %v2952_v29 = vadd.f32 %v588_v27, %v2947_v25  ;;  %v590_v30 = vpop.f32.mrb[1].mxu0  ;;  %v670_v31 = vpop.f32.mrb[1].mxu1  ;;  %v2955_v32 = vadd.f32 %v668_v28, %v2947_v25 }
 0x1a6   : > { %v2958_v33 = vadd.f32 %v590_v30, %v2949_v26  ;;  %v2961_v34 = vadd.f32 %v670_v31, %v2949_v26  ;;  %v592_v35 = vpop.f32.mrb[2].mxu0  ;;  %v672_v36 = vpop.f32.mrb[2].mxu1 }
 0x1a7   : > { %v2964_v37 = vadd.f32 %v672_v36, %v2947_v25  ;;  %v594_v38 = vpop.f32.mrb[3].mxu0  ;;  %v674_v39 = vpop.f32.mrb[3].mxu1  ;;  %v2976_v44 = vadd.f32 %v592_v35, %v2947_v25 }
 0x1a8   : > { %4034 = vst [vmem:[#allocation16_spill] sm:$0xff] %v2961_v34  ;;  %v2967_v40 = vadd.f32 %v674_v39, %v2949_v26  ;;  %v747_v41 = vmax.f32 %v2952_v29, %v2958_v33  ;;  %v795_v43 = vmax.f32 %v2955_v32, %v2961_v34  ;;  %v2979_v45 = vadd.f32 %v594_v38, %v2949_v26 }
 0x1a9   : > { %4035 = vst [vmem:[#allocation17_spill] sm:$0xff] %v2964_v37 }
 0x1aa   : > { %4036 = vst [vmem:[#allocation18_spill] sm:$0xff] %v2967_v40  ;;  %748 = vmax.xlane.f32.xlu0 %v747_v41  ;;  %v798_v42 = vmax.f32 %v2964_v37, %v2967_v40  ;;  %v750_v61 = vmax.f32 %v2976_v44, %v2979_v45 }
 0x1ac   : > { %799 = vmax.xlane.f32.xlu1 %v798_v42  ;;  %v598_v46 = vpop.f32.mrb[4].mxu0  ;;  %v678_v47 = vpop.f32.mrb[4].mxu1 }
 0x1ad   : > { %v2982_v48 = vadd.f32 %v598_v46, %v2947_v25  ;;  %v600_v49 = vpop.f32.mrb[5].mxu0  ;;  %v680_v50 = vpop.f32.mrb[5].mxu1  ;;  %v2988_v53 = vadd.f32 %v678_v47, %v2947_v25 }
 0x1ae   : > { %v2985_v51 = vadd.f32 %v600_v49, %v2949_v26  ;;  %796 = vmax.xlane.f32.xlu0 %v795_v43  ;;  %v602_v52 = vpop.f32.mrb[6].mxu0  ;;  %v2991_v54 = vadd.f32 %v680_v50, %v2949_v26  ;;  %v682_v55 = vpop.f32.mrb[6].mxu1 }
 0x1af   : > { %4037 = vst [vmem:[#allocation19_spill] sm:$0xff] %v2988_v53  ;;  %v2994_v56 = vadd.f32 %v602_v52, %v2947_v25  ;;  %v604_v57 = vpop.f32.mrb[7].mxu0  ;;  %v684_v58 = vpop.f32.mrb[7].mxu1  ;;  %v3004_v62 = vadd.f32 %v682_v55, %v2947_v25 }
 0x1b0   : > { %4038 = vst [vmem:[#allocation20_spill] sm:$0xff] %v2991_v54  ;;  %v2997_v59 = vadd.f32 %v604_v57, %v2949_v26  ;;  %v753_v60 = vmax.f32 %v2982_v48, %v2985_v51  ;;  %v3007_v63 = vadd.f32 %v684_v58, %v2949_v26  ;;  %v801_v1 = vmax.f32 %v2988_v53, %v2991_v54 }
 0x1b1   : > { %4039 = vst [vmem:[#allocation21_spill] sm:$0xff] %v3004_v62 }
 0x1b2   : > { %4040 = vst [vmem:[#allocation22_spill] sm:$0xff] %v3007_v63  ;;  %754 = vmax.xlane.f32.xlu1 %v753_v60  ;;  %751 = vmax.xlane.f32.xlu0 %v750_v61  ;;  %v756_v0 = vmax.f32 %v2994_v56, %v2997_v59  ;;  %v804_v7 = vmax.f32 %v3004_v62, %v3007_v63 }
 0x1b4   : > { %v608_v2 = vpop.f32.mrb[8].mxu0  ;;  %v688_v3 = vpop.f32.mrb[8].mxu1 }
 0x1b5   : > { %v3014_v4 = vadd.f32 %v608_v2, %v2947_v25  ;;  %v610_v5 = vpop.f32.mrb[9].mxu0  ;;  %v690_v6 = vpop.f32.mrb[9].mxu1  ;;  %v3022_v10 = vadd.f32 %v688_v3, %v2947_v25 }
 0x1b6   : > { %v3019_v8 = vadd.f32 %v610_v5, %v2949_v26  ;;  %757 = vmax.xlane.f32.xlu1 %v756_v0  ;;  %802 = vmax.xlane.f32.xlu0 %v801_v1  ;;  %v612_v9 = vpop.f32.mrb[10].mxu0  ;;  %v3025_v11 = vadd.f32 %v690_v6, %v2949_v26  ;;  %v692_v12 = vpop.f32.mrb[10].mxu1 }
 0x1b7   : > { %4041 = vst [vmem:[#allocation23_spill] sm:$0xff] %v3022_v10  ;;  %v3028_v13 = vadd.f32 %v612_v9, %v2947_v25  ;;  %v614_v14 = vpop.f32.mrb[11].mxu0  ;;  %v694_v15 = vpop.f32.mrb[11].mxu1  ;;  %v3036_v18 = vadd.f32 %v692_v12, %v2947_v25 }
 0x1b8   : > { %4042 = vst [vmem:[#allocation24_spill] sm:$0xff] %v3025_v11  ;;  %v3031_v16 = vadd.f32 %v614_v14, %v2949_v26  ;;  %v759_v17 = vmax.f32 %v3014_v4, %v3019_v8  ;;  %v3039_v19 = vadd.f32 %v694_v15, %v2949_v26  ;;  %v807_v23 = vmax.f32 %v3022_v10, %v3025_v11 }
 0x1b9   : > { %4043 = vst [vmem:[#allocation25_spill] sm:$0xff] %v3036_v18 }
 0x1ba   : > { %4044 = vst [vmem:[#allocation26_spill] sm:$0xff] %v3039_v19  ;;  %805 = vmax.xlane.f32.xlu1 %v804_v7  ;;  %760 = vmax.xlane.f32.xlu0 %v759_v17  ;;  %v762_v22 = vmax.f32 %v3028_v13, %v3031_v16  ;;  %v810_v35 = vmax.f32 %v3036_v18, %v3039_v19 }
 0x1bc   : > { %v618_v24 = vpop.f32.mrb[12].mxu0  ;;  %v698_v27 = vpop.f32.mrb[12].mxu1 }
 0x1bd   : > { %v3046_v28 = vadd.f32 %v618_v24, %v2947_v25  ;;  %v620_v30 = vpop.f32.mrb[13].mxu0  ;;  %v700_v31 = vpop.f32.mrb[13].mxu1  ;;  %v3054_v39 = vadd.f32 %v698_v27, %v2947_v25 }
 0x1be   : > { %v3051_v36 = vadd.f32 %v620_v30, %v2949_v26  ;;  %763 = vmax.xlane.f32.xlu1 %v762_v22  ;;  %808 = vmax.xlane.f32.xlu0 %v807_v23  ;;  %v622_v38 = vpop.f32.mrb[14].mxu0  ;;  %v3057_v41 = vadd.f32 %v700_v31, %v2949_v26  ;;  %v702_v42 = vpop.f32.mrb[14].mxu1 }
 0x1bf   : > { %4045 = vst [vmem:[#allocation27_spill] sm:$0xff] %v3054_v39  ;;  %v3060_v43 = vadd.f32 %v622_v38, %v2947_v25  ;;  %v624_v46 = vpop.f32.mrb[15].mxu0  ;;  %v704_v47 = vpop.f32.mrb[15].mxu1  ;;  %v3068_v52 = vadd.f32 %v702_v42, %v2947_v25 }
 0x1c0   : > { %4046 = vst [vmem:[#allocation28_spill] sm:$0xff] %v3057_v41  ;;  %v3063_v49 = vadd.f32 %v624_v46, %v2949_v26  ;;  %v765_v50 = vmax.f32 %v3046_v28, %v3051_v36  ;;  %v3071_v55 = vadd.f32 %v704_v47, %v2949_v26  ;;  %v813_v58 = vmax.f32 %v3054_v39, %v3057_v41 }
 0x1c1   : > { %4047 = vst [vmem:[#allocation29_spill] sm:$0xff] %v3068_v52 }
 0x1c2   : > { %4048 = vst [vmem:[#allocation30_spill] sm:$0xff] %v3071_v55  ;;  %811 = vmax.xlane.f32.xlu1 %v810_v35  ;;  %766 = vmax.xlane.f32.xlu0 %v765_v50  ;;  %v768_v57 = vmax.f32 %v3060_v43, %v3063_v49  ;;  %v816_v3 = vmax.f32 %v3068_v52, %v3071_v55 }
 0x1c4   : > { %v628_v60 = vpop.f32.mrb[16].mxu0  ;;  %v708_v61 = vpop.f32.mrb[16].mxu1 }
 0x1c5   : > { %v3078_v0 = vadd.f32 %v628_v60, %v2947_v25  ;;  %v630_v1 = vpop.f32.mrb[17].mxu0  ;;  %v710_v2 = vpop.f32.mrb[17].mxu1  ;;  %v3086_v7 = vadd.f32 %v708_v61, %v2947_v25 }
 0x1c6   : > { %v3083_v5 = vadd.f32 %v630_v1, %v2949_v26  ;;  %769 = vmax.xlane.f32.xlu1 %v768_v57  ;;  %814 = vmax.xlane.f32.xlu0 %v813_v58  ;;  %v632_v6 = vpop.f32.mrb[18].mxu0  ;;  %v3089_v9 = vadd.f32 %v710_v2, %v2949_v26  ;;  %v712_v12 = vpop.f32.mrb[18].mxu1 }
 0x1c7   : > { %4049 = vst [vmem:[#allocation31_spill] sm:$0xff] %v3086_v7  ;;  %v3092_v14 = vadd.f32 %v632_v6, %v2947_v25  ;;  %v634_v15 = vpop.f32.mrb[19].mxu0  ;;  %v714_v17 = vpop.f32.mrb[19].mxu1  ;;  %v3100_v24 = vadd.f32 %v712_v12, %v2947_v25 }
 0x1c8   : > { %4050 = vst [vmem:[#allocation32_spill] sm:$0xff] %v3089_v9  ;;  %v3095_v22 = vadd.f32 %v634_v15, %v2949_v26  ;;  %v771_v23 = vmax.f32 %v3078_v0, %v3083_v5  ;;  %v3103_v27 = vadd.f32 %v714_v17, %v2949_v26  ;;  %v819_v31 = vmax.f32 %v3086_v7, %v3089_v9 }
 0x1c9   : > { %4051 = vst [vmem:[#allocation33_spill] sm:$0xff] %v3100_v24 }
 0x1ca   : > { %4052 = vst [vmem:[#allocation34_spill] sm:$0xff] %v3103_v27  ;;  %817 = vmax.xlane.f32.xlu1 %v816_v3  ;;  %772 = vmax.xlane.f32.xlu0 %v771_v23  ;;  %v774_v30 = vmax.f32 %v3092_v14, %v3095_v22  ;;  %v822_v50 = vmax.f32 %v3100_v24, %v3103_v27 }
 0x1cc   : > { %v638_v35 = vpop.f32.mrb[20].mxu0  ;;  %v718_v38 = vpop.f32.mrb[20].mxu1 }
 0x1cd   : > { %v3110_v42 = vadd.f32 %v638_v35, %v2947_v25  ;;  %v640_v46 = vpop.f32.mrb[21].mxu0  ;;  %v720_v47 = vpop.f32.mrb[21].mxu1  ;;  %v3118_v60 = vadd.f32 %v718_v38, %v2947_v25 }
 0x1ce   : > { %v3115_v57 = vadd.f32 %v640_v46, %v2949_v26  ;;  %775 = vmax.xlane.f32.xlu1 %v774_v30  ;;  %820 = vmax.xlane.f32.xlu0 %v819_v31  ;;  %v642_v58 = vpop.f32.mrb[22].mxu0  ;;  %v3121_v61 = vadd.f32 %v720_v47, %v2949_v26  ;;  %v722_v1 = vpop.f32.mrb[22].mxu1 }
 0x1cf   : > { %4053 = vst [vmem:[#allocation35_spill] sm:$0xff] %v3118_v60  ;;  %v3124_v2 = vadd.f32 %v642_v58, %v2947_v25  ;;  %v644_v3 = vpop.f32.mrb[23].mxu0  ;;  %v724_v6 = vpop.f32.mrb[23].mxu1  ;;  %v3132_v17 = vadd.f32 %v722_v1, %v2947_v25 }
 0x1d0   : > { %4054 = vst [vmem:[#allocation36_spill] sm:$0xff] %v3121_v61  ;;  %v3127_v12 = vadd.f32 %v644_v3, %v2949_v26  ;;  %v777_v15 = vmax.f32 %v3110_v42, %v3115_v57  ;;  %v3135_v23 = vadd.f32 %v724_v6, %v2949_v26  ;;  %v825_v31 = vmax.f32 %v3118_v60, %v3121_v61 }
 0x1d1   : > { %4055 = vst [vmem:[#allocation37_spill] sm:$0xff] %v3132_v17 }
 0x1d2   : > { %4056 = vst [vmem:[#allocation38_spill] sm:$0xff] %v3135_v23  ;;  %823 = vmax.xlane.f32.xlu1 %v822_v50  ;;  %778 = vmax.xlane.f32.xlu0 %v777_v15  ;;  %v780_v30 = vmax.f32 %v3124_v2, %v3127_v12  ;;  %v828_v1 = vmax.f32 %v3132_v17, %v3135_v23 }
 0x1d4   : > { %v648_v35 = vpop.f32.mrb[24].mxu0  ;;  %v728_v38 = vpop.f32.mrb[24].mxu1 }
 0x1d5   : > { %v3142_v46 = vadd.f32 %v648_v35, %v2947_v25  ;;  %v650_v47 = vpop.f32.mrb[25].mxu0  ;;  %v730_v58 = vpop.f32.mrb[25].mxu1  ;;  %v3150_v6 = vadd.f32 %v728_v38, %v2947_v25 }
 0x1d6   : > { %v3147_v3 = vadd.f32 %v650_v47, %v2949_v26  ;;  %781 = vmax.xlane.f32.xlu1 %v780_v30  ;;  %826 = vmax.xlane.f32.xlu0 %v825_v31  ;;  %v652_v50 = vpop.f32.mrb[26].mxu0  ;;  %v3153_v15 = vadd.f32 %v730_v58, %v2949_v26  ;;  %v732_v20 = vpop.f32.mrb[26].mxu1 }
 0x1d7   : > { %4057 = vst [vmem:[#allocation39_spill] sm:$0xff] %v3150_v6  ;;  %v3156_v35 = vadd.f32 %v652_v50, %v2947_v25  ;;  %v654_v21 = vpop.f32.mrb[27].mxu0  ;;  %v734_v61 = vpop.f32.mrb[27].mxu1  ;;  %v3164_v31 = vadd.f32 %v732_v20, %v2947_v25 }
 0x1d8   : > { %4058 = vst [vmem:[#allocation40_spill] sm:$0xff] %v3153_v15  ;;  %v3159_v23 = vadd.f32 %v654_v21, %v2949_v26  ;;  %v783_v30 = vmax.f32 %v3142_v46, %v3147_v3  ;;  %v3167_v38 = vadd.f32 %v734_v61, %v2949_v26  ;;  %v831_v58 = vmax.f32 %v3150_v6, %v3153_v15 }
 0x1d9   : > { %4059 = vst [vmem:[#allocation41_spill] sm:$0xff] %v3164_v31 }
 0x1da   : > { %829 = vmax.xlane.f32.xlu1 %v828_v1  ;;  %784 = vmax.xlane.f32.xlu0 %v783_v30  ;;  %4060 = vst [vmem:[#allocation42_spill] sm:$0xff] %v3167_v38  ;;  %v786_v47 = vmax.f32 %v3156_v35, %v3159_v23  ;;  %v834_v15 = vmax.f32 %v3164_v31, %v3167_v38  ;;  %v1239_v31 = vld [vmem:[%s2829_s13 + $0x60] sm:$0xff] }
 0x1dc   : > { %v658_v50 = vpop.f32.mrb[28].mxu0  ;;  %v738_v21 = vpop.f32.mrb[28].mxu1 }
 0x1dd   : > { %v3174_v17 = vadd.f32 %v658_v50, %v2947_v25  ;;  %v660_v60 = vpop.f32.mrb[29].mxu0  ;;  %v3177_v20 = vadd.f32 %v738_v21, %v2947_v25  ;;  %v740_v1 = vpop.f32.mrb[29].mxu1 }
 0x1de   : > { %v3180_v30 = vadd.f32 %v660_v60, %v2949_v26  ;;  %787 = vmax.xlane.f32.xlu1 %v786_v47  ;;  %832 = vmax.xlane.f32.xlu0 %v831_v58  ;;  %v662_v61 = vpop.f32.mrb[30].mxu0  ;;  %v3185_v6 = vadd.f32 %v740_v1, %v2949_v26  ;;  %v742_v50 = vpop.f32.mrb[30].mxu1 }
 0x1df   : > { %4061 = vst [vmem:[#allocation43_spill] sm:$0xff] %v3177_v20  ;;  %v3188_v21 = vadd.f32 %v662_v61, %v2947_v25  ;;  %v664_v27 = vpop.f32.mrb[31].mxu0  ;;  %v3191_v60 = vadd.f32 %v742_v50, %v2947_v25  ;;  %v744_v47 = vpop.f32.mrb[31].mxu1  ;;  %v1238_v61 = vld [vmem:[%s2829_s13 + $0x58] sm:$0xff]  ;;  %v1240_v25 = vld [vmem:[%s2829_s13 + $0x68] sm:$0xff] }
 0x1e0   : > { %4062 = vst [vmem:[#allocation44_spill] sm:$0xff] %v3185_v6  ;;  %v3194_v58 = vadd.f32 %v664_v27, %v2949_v26  ;;  %v789_v24 = vmax.f32 %v3174_v17, %v3180_v30  ;;  %v3199_v38 = vadd.f32 %v744_v47, %v2949_v26  ;;  %v837_v27 = vmax.f32 %v3177_v20, %v3185_v6  ;;  %v3208_v50 = vpop.permute.xlu0 %1266  ;;  %v3216_v47 = vpop.permute.xlu1 %1263 }
 0x1e1   : > { %4063 = vst [vmem:[#allocation45_spill] sm:$0xff] %v3191_v60 }
 0x1e2   : > { %4064 = vst [vmem:[#allocation46_spill] sm:$0xff] %v3199_v38  ;;  %835 = vmax.xlane.f32.xlu1 %v834_v15  ;;  %790 = vmax.xlane.f32.xlu0 %v789_v24  ;;  %v792_v1 = vmax.f32 %v3188_v21, %v3194_v58  ;;  %v840_v26 = vmax.f32 %v3191_v60, %v3199_v38 }
 0x1e4   : > { %v3212_v24 = vpop.permute.xlu0 %1269 }
 0x1e6   : > { %793 = vmax.xlane.f32.xlu1 %v792_v1 }
 0x1e8   : > { %v3214_v15 = vpop.permute.xlu0 %1275 }
 0x1ec   : > { %v3218_v1 = vpop.permute.xlu0 %1281 }
 0x1f7   : > { %1296 = vperm.xlu1 %2155, %v1238_v61   ;;  %v3222_v61 = vpop.permute.xlu0 %1287 }
 0x1f8   : > { %1299 = vperm.xlu0 %2156, %v1239_v31   ;;  %v3220_v31 = vpop.permute.xlu1 %1272 }
 0x1fb   : > { %1302 = vperm.xlu1 %2155, %v1240_v25   ;;  %v3228_v6 = vpop.permute.xlu0 %1293 }
 0x1fc   : > { %v3224_v25 = vpop.permute.xlu1 %1278 }
 0x217   : > { %838 = vmax.xlane.f32.xlu0 %v837_v27  ;;  %v3226_v27 = vpop.permute.xlu1 %1284 }
 0x21b   : > { %v3230_v38 = vpop.permute.xlu1 %1290 }
 0x21f   : > { %841 = vmax.xlane.f32.xlu1 %v840_v26 }
 0x237   : > { %v3232_v60 = vpop.xlane.xlu0 %748 }
 0x238   : > { %4065 = vst [vmem:[#allocation47_spill] sm:$0xff] %v3232_v60  ;;  %v843_v26 = vsub.f32 %v2952_v29, %v3232_v60  ;;  %v844_v20 = vsub.f32 %v2958_v33, %v3232_v60 }
 0x239   : > { %v3238_v55 = vpop.xlane.xlu1 %799 }
 0x23a   : > { %v907_v9 = vmul.f32 1.442695, %v843_v26  ;;  %v909_v7 = vmul.f32 1.442695, %v844_v20  ;;  %4066 = vst [vmem:[#allocation48_spill] sm:$0xff] %v3238_v55 }
 0x23b   : > { %v3240_v52 = vpop.xlane.xlu0 %796 }
 0x23c   : > { %2173 = vpow2.f32 %v907_v9 }
 0x23d   : > { %2175 = vpow2.f32 %v909_v7 }
 0x23f   : > { %v3242_v41 = vpop.xlane.xlu1 %754  ;;  %v3244_v39 = vpop.xlane.xlu0 %751 }
 0x240   : > { %4067 = vst [vmem:[#allocation49_spill] sm:$0xff] %v3242_v41  ;;  %4068 = vst [vmem:[#allocation50_spill] sm:$0xff] %v3244_v39  ;;  %v847_v19 = vsub.f32 %v2982_v48, %v3242_v41  ;;  %v845_v18 = vsub.f32 %v2976_v44, %v3244_v39  ;;  %v846_v26 = vsub.f32 %v2979_v45, %v3244_v39 }
 0x241   : > { %v848_v20 = vsub.f32 %v2985_v51, %v3242_v41 }
 0x242   : > { %v915_v60 = vmul.f32 1.442695, %v847_v19  ;;  %v911_v11 = vmul.f32 1.442695, %v845_v18  ;;  %v913_v9 = vmul.f32 1.442695, %v846_v26 }
 0x243   : > { %v3254_v7 = vpop.xlane.xlu1 %757  ;;  %v917_v54 = vmul.f32 1.442695, %v848_v20 }
 0x244   : > { %4069 = vst [vmem:[#allocation51_spill] sm:$0xff] %v3254_v7  ;;  %v849_v10 = vsub.f32 %v2994_v56, %v3254_v7  ;;  %v850_v63 = vsub.f32 %v2997_v59, %v3254_v7  ;;  %2177 = vpow2.f32 %v915_v60 }
 0x245   : > { %2179 = vpow2.f32 %v911_v11 }
 0x246   : > { %v2174_v62 = vpop.eup %2173  ;;  %v919_v53 = vmul.f32 1.442695, %v849_v10  ;;  %v921_v39 = vmul.f32 1.442695, %v850_v63  ;;  %2181 = vpow2.f32 %v913_v9  ;;  %v1244_v9 = vld [vmem:[%s2829_s13 + $0x88] sm:$0xff] }
 0x247   : > { %v2176_v40 = vpop.eup %2175 }
 0x248   : > { %2183 = vpow2.f32 %v919_v53  ;;  %v1035_v18 = vadd.f32 %v2176_v40, %v2174_v62  ;;  %v1243_v40 = vld [vmem:[%s2829_s13 + $0x80] sm:$0xff]  ;;  %v1248_v62 = vld [vmem:[%s2829_s13 + $0xa8] sm:$0xff] }
 0x249   : > { %2185 = vpow2.f32 %v921_v39  ;;  %v1242_v39 = vld [vmem:[%s2829_s13 + $0x78] sm:$0xff] }
 0x24a   : > { %2187 = vpow2.f32 %v917_v54  ;;  %1036 = vadd.xlane.f32.xlu0 %v1035_v18  ;;  %v1241_v54 = vld [vmem:[%s2829_s13 + $0x70] sm:$0xff]  ;;  %v1252_v18 = vld [vmem:[%s2829_s13 + $0xc8] sm:$0xff] }
 0x24e   : > { %v2178_v19 = vpop.eup %2177 }
 0x24f   : > { %v2180_v26 = vpop.eup %2179 }
 0x250   : > { %v2182_v41 = vpop.eup %2181 }
 0x251   : > { %v1038_v11 = vadd.f32 %v2182_v41, %v2180_v26  ;;  %v1250_v41 = vld [vmem:[%s2829_s13 + $0xb8] sm:$0xff] }
 0x252   : > { %v2184_v60 = vpop.eup %2183  ;;  %v1254_v26 = vld [vmem:[%s2829_s13 + $0xd8] sm:$0xff] }
 0x253   : > { %v2186_v20 = vpop.eup %2185  ;;  %1039 = vadd.xlane.f32.xlu1 %v1038_v11  ;;  %v1256_v11 = vld [vmem:[%s2829_s13 + $0xe8] sm:$0xff] }
 0x254   : > { %v2188_v10 = vpop.eup %2187  ;;  %v1044_v53 = vadd.f32 %v2186_v20, %v2184_v60  ;;  %v3269_v60 = vpop.xlane.xlu0 %802  ;;  %v1246_v20 = vld [vmem:[%s2829_s13 + $0x98] sm:$0xff] }
 0x255   : > { %v1041_v63 = vadd.f32 %v2188_v10, %v2178_v19  ;;  %v1245_v19 = vld [vmem:[%s2829_s13 + $0x90] sm:$0xff]  ;;  %4070 = vst [vmem:[#allocation52_spill] sm:$0xff] %v3269_v60  ;;  %v1247_v10 = vld [vmem:[%s2829_s13 + $0xa0] sm:$0xff] }
 0x256   : > { %1045 = vadd.xlane.f32.xlu0 %v1044_v53 }
 0x257   : > { %1042 = vadd.xlane.f32.xlu1 %v1041_v63  ;;  %v1257_v63 = vld [vmem:[%s2829_s13 + $0xf0] sm:$0xff] }
 0x258   : > { %v3274_v53 = vpop.xlane.xlu0 %760 }
 0x259   : > { %4071 = vst [vmem:[#allocation53_spill] sm:$0xff] %v3274_v53 }
 0x268   : > { %1311 = vperm.xlu1 %2155, %v1243_v40   ;;  %v3277_v40 = vpop.xlane.xlu1 %805 }
 0x269   : > { %4072 = vst [vmem:[#allocation54_spill] sm:$0xff] %v3277_v40 }
 0x26c   : > { %1305 = vperm.xlu0 %2156, %v1241_v54   ;;  %1326 = vperm.xlu1 %2155, %v1248_v62   ;;  %v1249_v54 = vld [vmem:[%s2829_s13 + $0xb0] sm:$0xff]  ;;  %v3280_v62 = vpop.xlane.xlu0 %808 }
 0x26d   : > { %4073 = vst [vmem:[#allocation55_spill] sm:$0xff] %v3280_v62 }
 0x270   : > { %1308 = vperm.xlu0 %2156, %v1242_v39   ;;  %1332 = vperm.xlu1 %2155, %v1250_v41   ;;  %v1251_v39 = vld [vmem:[%s2829_s13 + $0xc0] sm:$0xff]  ;;  %v3283_v41 = vpop.xlane.xlu1 %763 }
 0x271   : > { %4074 = vst [vmem:[#allocation56_spill] sm:$0xff] %v3283_v41 }
 0x274   : > { %1314 = vperm.xlu0 %2156, %v1244_v9   ;;  %1338 = vperm.xlu1 %2155, %v1252_v18   ;;  %v1253_v9 = vld [vmem:[%s2829_s13 + $0xd0] sm:$0xff]  ;;  %v3286_v18 = vpop.xlane.xlu0 %766 }
 0x275   : > { %4075 = vst [vmem:[#allocation57_spill] sm:$0xff] %v3286_v18 }
 0x278   : > { %1317 = vperm.xlu0 %2156, %v1245_v19   ;;  %1344 = vperm.xlu1 %2155, %v1254_v26   ;;  %v3288_v19 = vpop.xlane.xlu1 %811  ;;  %v851_v26 = vsub.f32 %v3014_v4, %v3274_v53 }
 0x279   : > { %4076 = vst [vmem:[#allocation58_spill] sm:$0xff] %v3288_v19  ;;  %v854_v19 = vsub.f32 %v3031_v16, %v3283_v41 }
 0x27c   : > { %1320 = vperm.xlu0 %2156, %v1246_v20   ;;  %1350 = vperm.xlu1 %2155, %v1256_v11   ;;  %v1255_v20 = vld [vmem:[%s2829_s13 + $0xe0] sm:$0xff]  ;;  %v852_v11 = vsub.f32 %v3019_v8, %v3274_v53  ;;  %v855_v53 = vsub.f32 %v3046_v28, %v3286_v18 }
 0x27e   : > { %v925_v7 = vmul.f32 1.442695, %v852_v11  ;;  %v931_v11 = vmul.f32 1.442695, %v855_v53 }
 0x280   : > { %1323 = vperm.xlu0 %2156, %v1247_v10   ;;  %1353 = vperm.xlu1 %2155, %v1257_v63   ;;  %v3295_v10 = vpop.xlane.xlu0 %814  ;;  %v923_v63 = vmul.f32 1.442695, %v851_v26  ;;  %v856_v26 = vsub.f32 %v3051_v36, %v3286_v18 }
 0x281   : > { %4077 = vst [vmem:[#allocation59_spill] sm:$0xff] %v3295_v10  ;;  %v929_v10 = vmul.f32 1.442695, %v854_v19 }
 0x282   : > { %2189 = vpow2.f32 %v923_v63  ;;  %v933_v63 = vmul.f32 1.442695, %v856_v26 }
 0x283   : > { %2191 = vpow2.f32 %v925_v7 }
 0x284   : > { %1329 = vperm.xlu0 %2156, %v1249_v54   ;;  %v853_v54 = vsub.f32 %v3028_v13, %v3283_v41 }
 0x286   : > { %v927_v62 = vmul.f32 1.442695, %v853_v54 }
 0x288   : > { %1335 = vperm.xlu0 %2156, %v1251_v39   ;;  %v1258_v39 = vld [vmem:[%s2829_s13 + $0xf8] sm:$0xff]  ;;  %2193 = vpow2.f32 %v927_v62 }
 0x289   : > { %2195 = vpow2.f32 %v929_v10 }
 0x28a   : > { %2197 = vpow2.f32 %v931_v11  ;;  %v4084_v11 = vlaneseq }
 0x28b   : > { %2199 = vpow2.f32 %v933_v63 }
 0x28c   : > { %1341 = vperm.xlu0 %2156, %v1253_v9   ;;  %v3302_v9 = vpop.xlane.xlu1 %769  ;;  %v2190_v53 = vpop.eup %2189  ;;  %v3329_v63 = vand.u32 127, %v4084_v11 }
 0x28d   : > { %4078 = vst [vmem:[#allocation60_spill] sm:$0xff] %v3302_v9  ;;  %v857_v7 = vsub.f32 %v3060_v43, %v3302_v9  ;;  %v858_v19 = vsub.f32 %v3063_v49, %v3302_v9  ;;  %v2192_v60 = vpop.eup %2191 }
 0x28e   : > { %v1047_v37 = vadd.f32 %v2192_v60, %v2190_v53  ;;  %vm1358_vm1 = vcmp.eq.s32.totalorder %v3329_v63, %v3216_v47  ;;  %vm1366_vm3 = vcmp.eq.s32.totalorder %v3329_v63, %v3214_v15  ;;  %vm1360_vm5 = vcmp.eq.s32.totalorder %v3329_v63, %v3208_v50 }
 0x28f   : > { %v937_v10 = vmul.f32 1.442695, %v858_v19  ;;  %vm1368_vm7 = vcmp.eq.s32.totalorder %v3329_v63, %v3224_v25  ;;  %vm1370_vm9 = vcmp.eq.s32.totalorder %v3329_v63, %v3218_v1  ;;  %vm1362_vm11 = vcmp.eq.s32.totalorder %v3329_v63, %v3212_v24 }
 0x290   : > { %1347 = vperm.xlu0 %2156, %v1255_v20   ;;  %v3308_v20 = vpop.xlane.xlu0 %772  ;;  %v3310_v40 = vpop.xlane.xlu1 %817  ;;  %vm1372_vm13 = vcmp.eq.s32.totalorder %v3329_v63, %v3226_v27  ;;  %vm1374_vm15 = vcmp.eq.s32.totalorder %v3329_v63, %v3222_v61 }
 0x291   : > { %4079 = vst [vmem:[#allocation61_spill] sm:$0xff] %v3308_v20  ;;  %4080 = vst [vmem:[#allocation62_spill] sm:$0xff] %v3310_v40  ;;  %v859_v41 = vsub.f32 %v3078_v0, %v3308_v20  ;;  %v860_v54 = vsub.f32 %v3083_v5, %v3308_v20  ;;  %v935_v40 = vmul.f32 1.442695, %v857_v7 }
 0x292   : > { %v2194_v20 = vpop.eup %2193 }
 0x293   : > { %v941_v18 = vmul.f32 1.442695, %v860_v54  ;;  %v2196_v55 = vpop.eup %2195 }
 0x294   : > { %1356 = vperm.xlu0 %2156, %v1258_v39   ;;  %v939_v39 = vmul.f32 1.442695, %v859_v41  ;;  %v3320_v62 = vpop.xlane.xlu1 %775  ;;  %v3322_v26 = vpop.xlane.xlu0 %820  ;;  %v1050_v19 = vadd.f32 %v2196_v55, %v2194_v20 }
 0x295   : > { %4081 = vst [vmem:[#allocation63_spill] sm:$0xff] %v3320_v62  ;;  %4082 = vst [vmem:[#allocation64_spill] sm:$0xff] %v3322_v26  ;;  %v861_v41 = vsub.f32 %v3092_v14, %v3320_v62  ;;  %v862_v54 = vsub.f32 %v3095_v22, %v3320_v62 }
 0x296   : > { %2201 = vpow2.f32 %v939_v39  ;;  %v3336_v39 = vadd.s32 128, %v3329_v63 }
 0x297   : > { %2203 = vpow2.f32 %v941_v18  ;;  %v2198_v18 = vpop.eup %2197  ;;  %v943_v60 = vmul.f32 1.442695, %v861_v41  ;;  %v945_v53 = vmul.f32 1.442695, %v862_v54 }
 0x298   : > { %2205 = vpow2.f32 %v935_v40  ;;  %v3324_v9 = vpop.xlane.xlu1 %823  ;;  %v3333_v7 = vpop.xlane.xlu0 %778  ;;  %vm1359_vm2 = vcmp.eq.s32.totalorder %v3336_v39, %v3216_v47  ;;  %vm1367_vm4 = vcmp.eq.s32.totalorder %v3336_v39, %v3214_v15  ;;  %vm1361_vm6 = vcmp.eq.s32.totalorder %v3336_v39, %v3208_v50 }
 0x299   : > { %2207 = vpow2.f32 %v937_v10  ;;  %4083 = vst [vmem:[#allocation65_spill] sm:$0xff] %v3324_v9  ;;  %v2200_v40 = vpop.eup %2199  ;;  %v863_v62 = vsub.f32 %v3110_v42, %v3333_v7  ;;  %v864_v20 = vsub.f32 %v3115_v57, %v3333_v7  ;;  %vm1369_vm8 = vcmp.eq.s32.totalorder %v3336_v39, %v3224_v25 }
 0x29a   : > { %v1053_v11 = vadd.f32 %v2200_v40, %v2198_v18  ;;  %2209 = vpow2.f32 %v943_v60  ;;  %v1422_v18 = vsel %vm1358_vm1, %v2952_v29, 0.0  ;;  %v1431_v29 = vsel %vm1367_vm4, %v3019_v8, 0.0 }
 0x29b   : > { %2211 = vpow2.f32 %v945_v53  ;;  %v947_v47 = vmul.f32 1.442695, %v863_v62  ;;  %v1425_v62 = vsel %vm1361_vm6, %v2979_v45, 0.0  ;;  %v1432_v50 = vsel %vm1368_vm7, %v3028_v13, 0.0 }
 0x29c   : > { %v3338_v10 = vpop.xlane.xlu1 %781  ;;  %vm1371_vm10 = vcmp.eq.s32.totalorder %v3336_v39, %v3218_v1  ;;  %vm1363_vm12 = vcmp.eq.s32.totalorder %v3336_v39, %v3212_v24  ;;  %vm1373_vm14 = vcmp.eq.s32.totalorder %v3336_v39, %v3226_v27  ;;  %vm1375_vm0 = vcmp.eq.s32.totalorder %v3336_v39, %v3222_v61 }
 0x29d   : > { %2213 = vpow2.f32 %v947_v47  ;;  %v865_v60 = vsub.f32 %v3124_v2, %v3338_v10  ;;  %v866_v8 = vsub.f32 %v3127_v12, %v3338_v10  ;;  %vm1364_vm1 = vcmp.eq.s32.totalorder %v3329_v63, %v3220_v31 }
 0x29e   : > { %vm1377_vm4 = vcmp.eq.s32.totalorder %v3336_v39, %v3230_v38  ;;  %vm1379_vm6 = vcmp.eq.s32.totalorder %v3336_v39, %v3228_v6 }
 0x2a0   : > { %v2202_v9 = vpop.eup %2201  ;;  %v3354_v54 = vpop.xlane.xlu1 %829 }
 0x2a1   : > { %v2204_v26 = vpop.eup %2203  ;;  %4085 = vst [vmem:[#allocation66_spill] sm:$0xff] %v3354_v54 }
 0x2a2   : > { %v2206_v34 = vpop.eup %2205  ;;  %v1059_v41 = vadd.f32 %v2204_v26, %v2202_v9  ;;  %v949_v9 = vmul.f32 1.442695, %v864_v20  ;;  %v1430_v26 = vsel %vm1366_vm3, %v3014_v4, 0.0  ;;  %v1433_v4 = vsel %vm1369_vm8, %v3031_v16, 0.0 }
 0x2a3   : > { %v2208_v55 = vpop.eup %2207  ;;  %v1498_v53 = vadd.f32 %v1431_v29, %v1430_v26  ;;  %v951_v16 = vmul.f32 1.442695, %v865_v60  ;;  %v1434_v20 = vsel %vm1370_vm9, %v3046_v28, 0.0  ;;  %v1426_v28 = vsel %vm1362_vm11, %v2982_v48, 0.0 }
 0x2a4   : > { %1048 = vadd.xlane.f32.xlu1 %v1047_v37  ;;  %v3340_v37 = vpop.xlane.xlu0 %826  ;;  %v1056_v40 = vadd.f32 %v2208_v55, %v2206_v34  ;;  %v1424_v34 = vsel %vm1360_vm5, %v2976_v44, 0.0  ;;  %2215 = vpow2.f32 %v949_v9  ;;  %v3378_v25 = vpop.xlane.xlu1 %787  ;;  %v1501_v55 = vadd.f32 %v1433_v4, %v1432_v50 }
 0x2a5   : > { %v2210_v44 = vpop.eup %2209  ;;  %v1489_v45 = vadd.f32 %v1425_v62, %v1424_v34  ;;  %v1436_v26 = vsel %vm1372_vm13, %v3060_v43, 0.0  ;;  %2217 = vpow2.f32 %v951_v16  ;;  %v1437_v34 = vsel %vm1373_vm14, %v3063_v49, 0.0 }
 0x2a6   : > { %v2212_v13 = vpop.eup %2211  ;;  %v870_v62 = vsub.f32 %v3159_v23, %v3378_v25  ;;  %v1507_v50 = vadd.f32 %v1437_v34, %v1436_v26  ;;  %v1438_v49 = vsel %vm1374_vm15, %v3078_v0, 0.0  ;;  %vm1376_vm3 = vcmp.eq.s32.totalorder %v3329_v63, %v3230_v38  ;;  %v4088_v34 = vld [vmem:[#allocation48_spill] sm:$0xff] }
 0x2a7   : > { %v1062_v47 = vadd.f32 %v2212_v13, %v2210_v44  ;;  %v1439_v4 = vsel %vm1375_vm0, %v3083_v5, 0.0  ;;  %v1428_v13 = vsel %vm1364_vm1, %v2994_v56, 0.0  ;;  %vm1378_vm5 = vcmp.eq.s32.totalorder %v3329_v63, %v3228_v6 }
 0x2a8   : > { %1051 = vadd.xlane.f32.xlu1 %v1050_v19  ;;  %v1423_v19 = vsel %vm1359_vm2, %v2958_v33, 0.0  ;;  %v3364_v15 = vpop.xlane.xlu0 %784  ;;  %vm1365_vm2 = vcmp.eq.s32.totalorder %v3336_v39, %v3220_v31  ;;  %v1443_v26 = vsel %vm1379_vm6, %v3115_v57, 0.0 }
 0x2a9   : > { %v1486_v33 = vadd.f32 %v1423_v19, %v1422_v18  ;;  %v867_v1 = vsub.f32 %v3142_v46, %v3364_v15  ;;  %v953_v18 = vmul.f32 1.442695, %v866_v8  ;;  %v868_v19 = vsub.f32 %v3147_v3, %v3364_v15 }
 0x2aa   : > { %v961_v8 = vmul.f32 1.442695, %v870_v62  ;;  %v1429_v5 = vsel %vm1365_vm2, %v2997_v59, 0.0 }
 0x2ab   : > { %v955_v29 = vmul.f32 1.442695, %v867_v1  ;;  %2219 = vpow2.f32 %v953_v18  ;;  %v957_v48 = vmul.f32 1.442695, %v868_v19  ;;  %v1495_v38 = vadd.f32 %v1429_v5, %v1428_v13  ;;  %v4091_v13 = vld [vmem:[#allocation52_spill] sm:$0xff]  ;;  %v4092_v5 = vld [vmem:[#allocation19_spill] sm:$0xff] }
 0x2ac   : > { %1054 = vadd.xlane.f32.xlu1 %v1053_v11  ;;  %v3384_v11 = vpop.xlane.xlu0 %832 }
 0x2ad   : > { %2221 = vpow2.f32 %v955_v29 }
 0x2ae   : > { %2223 = vpow2.f32 %v957_v48  ;;  %v4089_v48 = vld [vmem:[#allocation17_spill] sm:$0xff] }
 0x2af   : > { %v877_v62 = vsub.f32 %v4089_v48, %v4088_v34 }
 0x2b0   : > { %1060 = vadd.xlane.f32.xlu1 %v1059_v41  ;;  %v1435_v41 = vsel %vm1371_vm10, %v3051_v36, 0.0  ;;  %v1427_v36 = vsel %vm1363_vm12, %v2985_v51, 0.0  ;;  %v3421_v24 = vpop.xlane.xlu0 %790  ;;  %v2214_v51 = vpop.eup %2213 }
 0x2b1   : > { %v1504_v9 = vadd.f32 %v1435_v41, %v1434_v20  ;;  %v1492_v43 = vadd.f32 %v1427_v36, %v1426_v28  ;;  %v2216_v27 = vpop.eup %2215  ;;  %v872_v61 = vsub.f32 %v3180_v30, %v3421_v24  ;;  %v1441_v20 = vsel %vm1377_vm4, %v3095_v22, 0.0 }
 0x2b2   : > { %v1065_v44 = vadd.f32 %v2216_v27, %v2214_v51  ;;  %v2218_v59 = vpop.eup %2217  ;;  %v875_v22 = vsub.f32 %v2955_v32, %v3240_v52 }
 0x2b3   : > { %1057 = vadd.xlane.f32.xlu0 %v1056_v40  ;;  %v3402_v40 = vpop.xlane.xlu1 %835  ;;  %v965_v56 = vmul.f32 1.442695, %v872_v61  ;;  %v975_v61 = vmul.f32 1.442695, %v877_v62  ;;  %v4098_v62 = vld [vmem:[#allocation23_spill] sm:$0xff] }
 0x2b4   : > { %1487 = vadd.xlane.f32.xlu1 %v1486_v33  ;;  %4086 = vst [vmem:[#allocation67_spill] sm:$0xff] %v3402_v40  ;;  %v869_v33 = vsub.f32 %v3156_v35, %v3378_v25  ;;  %v1300_v51 = vpop.permute.xlu0 %1299  ;;  %v971_v27 = vmul.f32 1.442695, %v875_v22 }
 0x2b5   : > { %vm1382_vm9 = vcmp.eq.s32.totalorder %v3329_v63, %v1300_v51  ;;  %vm1383_vm10 = vcmp.eq.s32.totalorder %v3336_v39, %v1300_v51 }
 0x2b6   : > { %v959_v60 = vmul.f32 1.442695, %v869_v33 }
 0x2b7   : > { %1499 = vadd.xlane.f32.xlu0 %v1498_v53  ;;  %v871_v53 = vsub.f32 %v3174_v17, %v3421_v24  ;;  %v3440_v0 = vpop.xlane.xlu1 %793 }
 0x2b8   : > { %1490 = vadd.xlane.f32.xlu1 %v1489_v45  ;;  %v1510_v45 = vadd.f32 %v1439_v4, %v1438_v49  ;;  %2225 = vpow2.f32 %v959_v60  ;;  %v873_v1 = vsub.f32 %v3188_v21, %v3440_v0  ;;  %v874_v41 = vsub.f32 %v3194_v58, %v3440_v0 }
 0x2b9   : > { %v963_v16 = vmul.f32 1.442695, %v871_v53  ;;  %2227 = vpow2.f32 %v961_v8 }
 0x2ba   : > { %v967_v19 = vmul.f32 1.442695, %v873_v1  ;;  %v969_v36 = vmul.f32 1.442695, %v874_v41  ;;  %v1446_v1 = vsel %vm1382_vm9, %v3142_v46, 0.0  ;;  %v4096_v46 = vld [vmem:[#allocation22_spill] sm:$0xff] }
 0x2bb   : > { %1502 = vadd.xlane.f32.xlu0 %v1501_v55  ;;  %v1440_v55 = vsel %vm1376_vm3, %v3092_v14, 0.0  ;;  %v2220_v14 = vpop.eup %2219  ;;  %v1297_v31 = vpop.permute.xlu1 %1296  ;;  %2229 = vpow2.f32 %v963_v16 }
 0x2bc   : > { %1063 = vadd.xlane.f32.xlu1 %v1062_v47  ;;  %v1513_v18 = vadd.f32 %v1441_v20, %v1440_v55  ;;  %v1442_v47 = vsel %vm1378_vm5, %v3110_v42, 0.0  ;;  %2231 = vpow2.f32 %v965_v56  ;;  %v2222_v29 = vpop.eup %2221  ;;  %vm1380_vm7 = vcmp.eq.s32.totalorder %v3329_v63, %v1297_v31  ;;  %v4090_v42 = vld [vmem:[#allocation18_spill] sm:$0xff] }
 0x2bd   : > { %vm1381_vm8 = vcmp.eq.s32.totalorder %v3336_v39, %v1297_v31  ;;  %v1068_v6 = vadd.f32 %v2220_v14, %v2218_v59  ;;  %v2224_v33 = vpop.eup %2223  ;;  %2233 = vpow2.f32 %v967_v19  ;;  %v1444_v49 = vsel %vm1380_vm7, %v3124_v2, 0.0  ;;  %v4093_v2 = vld [vmem:[#allocation20_spill] sm:$0xff]  ;;  %v4094_v14 = vld [vmem:[#allocation54_spill] sm:$0xff]  ;;  %v4095_v31 = vld [vmem:[#allocation21_spill] sm:$0xff] }
 0x2be   : > { %2235 = vpow2.f32 %v969_v36  ;;  %v1445_v60 = vsel %vm1381_vm8, %v3127_v12, 0.0  ;;  %v1071_v4 = vadd.f32 %v2224_v33, %v2222_v29  ;;  %v879_v55 = vsub.f32 %v4092_v5, %v4091_v13  ;;  %v4097_v33 = vld [vmem:[#allocation55_spill] sm:$0xff] }
 0x2bf   : > { %1505 = vadd.xlane.f32.xlu0 %v1504_v9  ;;  %v4087_v9 = vld [vmem:[#allocation16_spill] sm:$0xff]  ;;  %2237 = vpow2.f32 %v971_v27  ;;  %v1519_v16 = vadd.f32 %v1445_v60, %v1444_v49  ;;  %v880_v12 = vsub.f32 %v4093_v2, %v4091_v13  ;;  %v1447_v20 = vsel %vm1383_vm10, %v3147_v3, 0.0 }
 0x2c0   : > { %1493 = vadd.xlane.f32.xlu1 %v1492_v43  ;;  %v876_v28 = vsub.f32 %v4087_v9, %v3240_v52  ;;  %v878_v43 = vsub.f32 %v4090_v42, %v4088_v34  ;;  %v1522_v22 = vadd.f32 %v1447_v20, %v1446_v1  ;;  %v882_v3 = vsub.f32 %v4096_v46, %v4094_v14  ;;  %v3505_v1 = vpop.xlane.xlu0 %838 }
 0x2c1   : > { %v981_v19 = vmul.f32 1.442695, %v880_v12  ;;  %v883_v51 = vsub.f32 %v4098_v62, %v4097_v33 }
 0x2c2   : > { %v973_v57 = vmul.f32 1.442695, %v876_v28  ;;  %v2226_v53 = vpop.eup %2225  ;;  %v985_v27 = vmul.f32 1.442695, %v882_v3 }
 0x2c3   : > { %1508 = vadd.xlane.f32.xlu0 %v1507_v50  ;;  %v1516_v50 = vadd.f32 %v1443_v26, %v1442_v47  ;;  %v2228_v8 = vpop.eup %2227  ;;  %v987_v60 = vmul.f32 1.442695, %v883_v51  ;;  %v4107_v51 = vld [vmem:[#allocation29_spill] sm:$0xff] }
 0x2c4   : > { %1066 = vadd.xlane.f32.xlu1 %v1065_v44  ;;  %v1303_v44 = vpop.permute.xlu1 %1302  ;;  %2239 = vpow2.f32 %v973_v57  ;;  %v1074_v41 = vadd.f32 %v2228_v8, %v2226_v53  ;;  %v4100_v53 = vld [vmem:[#allocation58_spill] sm:$0xff] }
 0x2c5   : > { %v2230_v56 = vpop.eup %2229  ;;  %vm1384_vm11 = vcmp.eq.s32.totalorder %v3329_v63, %v1303_v44  ;;  %vm1385_vm12 = vcmp.eq.s32.totalorder %v3336_v39, %v1303_v44  ;;  %2241 = vpow2.f32 %v975_v61 }
 0x2c6   : > { %v2232_v59 = vpop.eup %2231  ;;  %v1448_v47 = vsel %vm1384_vm11, %v3156_v35, 0.0  ;;  %v1449_v28 = vsel %vm1385_vm12, %v3159_v23, 0.0 }
 0x2c7   : > { %1511 = vadd.xlane.f32.xlu0 %v1510_v45  ;;  %v977_v45 = vmul.f32 1.442695, %v878_v43  ;;  %v2234_v36 = vpop.eup %2233  ;;  %v1077_v26 = vadd.f32 %v2232_v59, %v2230_v56  ;;  %v1525_v43 = vadd.f32 %v1449_v28, %v1448_v47  ;;  %v4104_v59 = vld [vmem:[#allocation27_spill] sm:$0xff] }
 0x2c8   : > { %1496 = vadd.xlane.f32.xlu1 %v1495_v38  ;;  %v979_v38 = vmul.f32 1.442695, %v879_v55  ;;  %v2236_v29 = vpop.eup %2235  ;;  %v3501_v61 = vpop.xlane.xlu1 %841  ;;  %v4102_v55 = vld [vmem:[#allocation26_spill] sm:$0xff] }
 0x2c9   : > { %2243 = vpow2.f32 %v977_v45  ;;  %v2238_v49 = vpop.eup %2237  ;;  %v1080_v35 = vadd.f32 %v2236_v29, %v2234_v36 }
 0x2ca   : > { %2245 = vpow2.f32 %v979_v38 }
 0x2cb   : > { %1514 = vadd.xlane.f32.xlu0 %v1513_v18  ;;  %v881_v18 = vsub.f32 %v4095_v31, %v4094_v14  ;;  %2247 = vpow2.f32 %v981_v19  ;;  %v4105_v19 = vld [vmem:[#allocation28_spill] sm:$0xff] }
 0x2cc   : > { %1069 = vadd.xlane.f32.xlu1 %v1068_v6 }
 0x2cd   : > { %v983_v6 = vmul.f32 1.442695, %v881_v18 }
 0x2ce   : > { %v2240_v23 = vpop.eup %2239 }
 0x2cf   : > { %1517 = vadd.xlane.f32.xlu0 %v1516_v50  ;;  %v4099_v50 = vld [vmem:[#allocation24_spill] sm:$0xff]  ;;  %2249 = vpow2.f32 %v983_v6  ;;  %v2242_v44 = vpop.eup %2241  ;;  %v1083_v20 = vadd.f32 %v2240_v23, %v2238_v49  ;;  %v4106_v6 = vld [vmem:[#allocation62_spill] sm:$0xff] }
 0x2d0   : > { %1072 = vadd.xlane.f32.xlu1 %v1071_v4  ;;  %v884_v57 = vsub.f32 %v4099_v50, %v4097_v33  ;;  %v4101_v4 = vld [vmem:[#allocation25_spill] sm:$0xff]  ;;  %2251 = vpow2.f32 %v985_v27  ;;  %v4109_v23 = vld [vmem:[#allocation64_spill] sm:$0xff] }
 0x2d1   : > { %v885_v8 = vsub.f32 %v4101_v4, %v4100_v53  ;;  %2253 = vpow2.f32 %v987_v60  ;;  %v4110_v60 = vld [vmem:[#allocation31_spill] sm:$0xff] }
 0x2d2   : > { %v989_v45 = vmul.f32 1.442695, %v884_v57  ;;  %v4108_v57 = vld [vmem:[#allocation30_spill] sm:$0xff] }
 0x2d3   : > { %1520 = vadd.xlane.f32.xlu0 %v1519_v16  ;;  %v886_v16 = vsub.f32 %v4102_v55, %v4100_v53  ;;  %v2244_v12 = vpop.eup %2243  ;;  %v991_v56 = vmul.f32 1.442695, %v885_v8  ;;  %v890_v49 = vsub.f32 %v4108_v57, %v4106_v6  ;;  %v891_v8 = vsub.f32 %v4110_v60, %v4109_v23 }
 0x2d4   : > { %1075 = vadd.xlane.f32.xlu1 %v1074_v41  ;;  %v4103_v41 = vld [vmem:[#allocation59_spill] sm:$0xff]  ;;  %2255 = vpow2.f32 %v989_v45  ;;  %v2246_v47 = vpop.eup %2245  ;;  %v1086_v36 = vadd.f32 %v2244_v12, %v2242_v44 }
 0x2d5   : > { %v887_v38 = vsub.f32 %v4104_v59, %v4103_v41  ;;  %v888_v3 = vsub.f32 %v4105_v19, %v4103_v41  ;;  %2257 = vpow2.f32 %v991_v56  ;;  %v1001_v56 = vmul.f32 1.442695, %v890_v49 }
 0x2d7   : > { %1523 = vadd.xlane.f32.xlu0 %v1522_v22  ;;  %v993_v22 = vmul.f32 1.442695, %v886_v16  ;;  %v3513_v28 = vpop.xlane.xlu0 %1036  ;;  %v995_v29 = vmul.f32 1.442695, %v887_v38  ;;  %v997_v27 = vmul.f32 1.442695, %v888_v3 }
 0x2d8   : > { %1078 = vadd.xlane.f32.xlu1 %v1077_v26  ;;  %v2248_v26 = vpop.eup %2247  ;;  %v4111_v38 = vld [vmem:[#allocation32_spill] sm:$0xff] }
 0x2d9   : > { %2259 = vpow2.f32 %v993_v22  ;;  %v1089_v44 = vadd.f32 %v2248_v26, %v2246_v47  ;;  %v892_v22 = vsub.f32 %v4111_v38, %v4109_v23  ;;  %v4112_v47 = vld [vmem:[#allocation65_spill] sm:$0xff] }
 0x2da   : > { %2261 = vpow2.f32 %v995_v29  ;;  %v4113_v26 = vld [vmem:[#allocation33_spill] sm:$0xff] }
 0x2db   : > { %1526 = vadd.xlane.f32.xlu0 %v1525_v43  ;;  %v889_v43 = vsub.f32 %v4107_v51, %v4106_v6  ;;  %2263 = vpow2.f32 %v997_v27  ;;  %v893_v29 = vsub.f32 %v4113_v26, %v4112_v47 }
 0x2dc   : > { %1081 = vadd.xlane.f32.xlu1 %v1080_v35  ;;  %v2250_v35 = vpop.eup %2249 }
 0x2dd   : > { %v2252_v12 = vpop.eup %2251 }
 0x2de   : > { %v2254_v3 = vpop.eup %2253  ;;  %v1092_v6 = vadd.f32 %v2252_v12, %v2250_v35  ;;  %v4114_v35 = vld [vmem:[#allocation34_spill] sm:$0xff] }
 0x2df   : > { %v2256_v53 = vpop.eup %2255 }
 0x2e0   : > { %v3509_v18 = vpop.xlane.xlu1 %1039  ;;  %1084 = vadd.xlane.f32.xlu1 %v1083_v20  ;;  %v999_v20 = vmul.f32 1.442695, %v889_v43  ;;  %v2258_v23 = vpop.eup %2257  ;;  %v1095_v33 = vadd.f32 %v2256_v53, %v2254_v3  ;;  %v4116_v3 = vld [vmem:[#allocation36_spill] sm:$0xff] }
 0x2e2   : > { %2265 = vpow2.f32 %v999_v20 }
 0x2e3   : > { %v3523_v16 = vpop.xlane.xlu0 %1045  ;;  %2267 = vpow2.f32 %v1001_v56  ;;  %v2260_v20 = vpop.eup %2259 }
 0x2e4   : > { %1087 = vadd.xlane.f32.xlu1 %v1086_v36  ;;  %v3521_v45 = vpop.xlane.xlu1 %1042  ;;  %v1003_v36 = vmul.f32 1.442695, %v891_v8  ;;  %v894_v8 = vsub.f32 %v4114_v35, %v4112_v47 }
 0x2e6   : > { %2269 = vpow2.f32 %v1003_v36  ;;  %v896_v36 = vsub.f32 %v4116_v3, %v3340_v37 }
 0x2e8   : > { %1090 = vadd.xlane.f32.xlu1 %v1089_v44  ;;  %v1312_v43 = vpop.permute.xlu1 %1311  ;;  %v1005_v44 = vmul.f32 1.442695, %v892_v22  ;;  %v1009_v22 = vmul.f32 1.442695, %v894_v8 }
 0x2e9   : > { %vm1390_vm15 = vcmp.eq.s32.totalorder %v3329_v63, %v1312_v43  ;;  %vm1391_vm0 = vcmp.eq.s32.totalorder %v3336_v39, %v1312_v43 }
 0x2ea   : > { %2271 = vpow2.f32 %v1005_v44  ;;  %v1013_v44 = vmul.f32 1.442695, %v896_v36 }
 0x2eb   : > { %v1306_v41 = vpop.permute.xlu0 %1305 }
 0x2ec   : > { %vm1386_vm13 = vcmp.eq.s32.totalorder %v3329_v63, %v1306_v41  ;;  %vm1387_vm14 = vcmp.eq.s32.totalorder %v3336_v39, %v1306_v41  ;;  %1093 = vadd.xlane.f32.xlu1 %v1092_v6 }
 0x2ed   : > { %v1450_v27 = vsel %vm1386_vm13, %v3174_v17, 0.0  ;;  %v1451_v49 = vsel %vm1387_vm14, %v3180_v30, 0.0  ;;  %v1007_v17 = vmul.f32 1.442695, %v893_v29  ;;  %v4115_v30 = vld [vmem:[#allocation35_spill] sm:$0xff]  ;;  %v1098_v29 = vadd.f32 %v2260_v20, %v2258_v23 }
 0x2ee   : > { %v1528_v12 = vadd.f32 %v1451_v49, %v1450_v27  ;;  %v895_v6 = vsub.f32 %v4115_v30, %v3340_v37  ;;  %v2262_v27 = vpop.eup %2261  ;;  %v1454_v49 = vsel %vm1390_vm15, %v2955_v32, 0.0  ;;  %v4118_v32 = vld [vmem:[#allocation38_spill] sm:$0xff] }
 0x2ef   : > { %v1309_v41 = vpop.permute.xlu0 %1308  ;;  %v2264_v47 = vpop.eup %2263  ;;  %2273 = vpow2.f32 %v1007_v17  ;;  %v898_v8 = vsub.f32 %v4118_v32, %v3354_v54 }
 0x2f0   : > { %vm1388_vm1 = vcmp.eq.s32.totalorder %v3329_v63, %v1309_v41  ;;  %vm1389_vm2 = vcmp.eq.s32.totalorder %v3336_v39, %v1309_v41  ;;  %1529 = vadd.xlane.f32.xlu0 %v1528_v12  ;;  %1096 = vadd.xlane.f32.xlu1 %v1095_v33  ;;  %v1455_v12 = vsel %vm1391_vm0, %v4087_v9, 0.0  ;;  %2275 = vpow2.f32 %v1009_v22  ;;  %v2266_v23 = vpop.eup %2265  ;;  %v4119_v22 = vld [vmem:[#allocation39_spill] sm:$0xff] }
 0x2f1   : > { %v1452_v56 = vsel %vm1388_vm1, %v3188_v21, 0.0  ;;  %v1453_v53 = vsel %vm1389_vm2, %v3194_v58, 0.0  ;;  %v1011_v21 = vmul.f32 1.442695, %v895_v6  ;;  %v4117_v58 = vld [vmem:[#allocation37_spill] sm:$0xff]  ;;  %v1534_v9 = vadd.f32 %v1455_v12, %v1454_v49 }
 0x2f2   : > { %v1531_v43 = vadd.f32 %v1453_v53, %v1452_v56  ;;  %v897_v33 = vsub.f32 %v4117_v58, %v3354_v54  ;;  %v1101_v53 = vadd.f32 %v2264_v47, %v2262_v27  ;;  %v899_v36 = vsub.f32 %v4119_v22, %v3384_v11  ;;  %v1327_v27 = vpop.permute.xlu1 %1326 }
 0x2f3   : > { %v1315_v41 = vpop.permute.xlu0 %1314  ;;  %2277 = vpow2.f32 %v1011_v21  ;;  %v1017_v49 = vmul.f32 1.442695, %v898_v8  ;;  %vm1400_vm11 = vcmp.eq.s32.totalorder %v3329_v63, %v1327_v27  ;;  %vm1401_vm12 = vcmp.eq.s32.totalorder %v3336_v39, %v1327_v27 }
 0x2f4   : > { %vm1392_vm3 = vcmp.eq.s32.totalorder %v3329_v63, %v1315_v41  ;;  %vm1393_vm4 = vcmp.eq.s32.totalorder %v3336_v39, %v1315_v41  ;;  %1532 = vadd.xlane.f32.xlu0 %v1531_v43  ;;  %1099 = vadd.xlane.f32.xlu1 %v1098_v29  ;;  %v2268_v43 = vpop.eup %2267  ;;  %v1015_v6 = vmul.f32 1.442695, %v897_v33  ;;  %2279 = vpow2.f32 %v1013_v44  ;;  %v4121_v33 = vld [vmem:[#allocation41_spill] sm:$0xff] }
 0x2f5   : > { %v1456_v20 = vsel %vm1392_vm3, %v4089_v48, 0.0  ;;  %v1457_v56 = vsel %vm1393_vm4, %v4090_v42, 0.0  ;;  %v2270_v17 = vpop.eup %2269  ;;  %v4120_v48 = vld [vmem:[#allocation40_spill] sm:$0xff]  ;;  %v1019_v21 = vmul.f32 1.442695, %v899_v36  ;;  %v901_v44 = vsub.f32 %v4121_v33, %v3402_v40  ;;  %v4123_v36 = vld [vmem:[#allocation43_spill] sm:$0xff] }
 0x2f6   : > { %v900_v42 = vsub.f32 %v4120_v48, %v3384_v11  ;;  %v1537_v47 = vadd.f32 %v1457_v56, %v1456_v20  ;;  %v2272_v54 = vpop.eup %2271  ;;  %2281 = vpow2.f32 %v1015_v6 }
 0x2f7   : > { %v1318_v41 = vpop.permute.xlu0 %1317  ;;  %2283 = vpow2.f32 %v1017_v49  ;;  %v1023_v6 = vmul.f32 1.442695, %v901_v44  ;;  %v903_v49 = vsub.f32 %v4123_v36, %v3505_v1 }
 0x2f8   : > { %vm1394_vm5 = vcmp.eq.s32.totalorder %v3329_v63, %v1318_v41  ;;  %vm1395_vm6 = vcmp.eq.s32.totalorder %v3336_v39, %v1318_v41  ;;  %1535 = vadd.xlane.f32.xlu0 %v1534_v9  ;;  %1102 = vadd.xlane.f32.xlu1 %v1101_v53  ;;  %v1104_v41 = vadd.f32 %v2268_v43, %v2266_v23  ;;  %v1021_v8 = vmul.f32 1.442695, %v900_v42  ;;  %v1333_v42 = vpop.permute.xlu1 %1332 }
 0x2f9   : > { %v1458_v12 = vsel %vm1394_vm5, %v4092_v5, 0.0  ;;  %v1459_v29 = vsel %vm1395_vm6, %v4093_v2, 0.0  ;;  %v4122_v5 = vld [vmem:[#allocation42_spill] sm:$0xff]  ;;  %v2274_v23 = vpop.eup %2273  ;;  %v1107_v43 = vadd.f32 %v2272_v54, %v2270_v17  ;;  %2285 = vpow2.f32 %v1019_v21 }
 0x2fa   : > { %v902_v20 = vsub.f32 %v4122_v5, %v3402_v40  ;;  %v1540_v2 = vadd.f32 %v1459_v29, %v1458_v12  ;;  %2287 = vpow2.f32 %v1021_v8  ;;  %v1027_v44 = vmul.f32 1.442695, %v903_v49  ;;  %v4125_v8 = vld [vmem:[#allocation45_spill] sm:$0xff] }
 0x2fb   : > { %v1321_v9 = vpop.permute.xlu0 %1320  ;;  %2289 = vpow2.f32 %v1023_v6  ;;  %vm1404_vm15 = vcmp.eq.s32.totalorder %v3329_v63, %v1333_v42  ;;  %vm1405_vm0 = vcmp.eq.s32.totalorder %v3336_v39, %v1333_v42 }
 0x2fc   : > { %vm1396_vm7 = vcmp.eq.s32.totalorder %v3329_v63, %v1321_v9  ;;  %vm1397_vm8 = vcmp.eq.s32.totalorder %v3336_v39, %v1321_v9  ;;  %1538 = vadd.xlane.f32.xlu0 %v1537_v47  ;;  %1105 = vadd.xlane.f32.xlu1 %v1104_v41  ;;  %v2276_v47 = vpop.eup %2275  ;;  %v1025_v12 = vmul.f32 1.442695, %v902_v20  ;;  %v905_v20 = vsub.f32 %v4125_v8, %v3501_v61  ;;  %v3587_v40 = vpop.permute.xlu1 %1338 }
 0x2fd   : > { %v1460_v56 = vsel %vm1396_vm7, %v4095_v31, 0.0  ;;  %v1461_v53 = vsel %vm1397_vm8, %v4096_v46, 0.0  ;;  %v4124_v31 = vld [vmem:[#allocation44_spill] sm:$0xff]  ;;  %v2278_v17 = vpop.eup %2277  ;;  %vm1408_vm7 = vcmp.eq.s32.totalorder %v3329_v63, %v3587_v40  ;;  %vm1409_vm8 = vcmp.eq.s32.totalorder %v3336_v39, %v3587_v40 }
 0x2fe   : > { %v904_v46 = vsub.f32 %v4124_v31, %v3505_v1  ;;  %v1543_v54 = vadd.f32 %v1461_v53, %v1460_v56  ;;  %v2280_v21 = vpop.eup %2279  ;;  %2291 = vpow2.f32 %v1025_v12  ;;  %v1031_v49 = vmul.f32 1.442695, %v905_v20 }
 0x2ff   : > { %v1324_v9 = vpop.permute.xlu0 %1323  ;;  %v1113_v27 = vadd.f32 %v2280_v21, %v2278_v17  ;;  %2293 = vpow2.f32 %v1027_v44  ;;  %v1468_v44 = vsel %vm1404_vm15, %v4107_v51, 0.0  ;;  %v1469_v20 = vsel %vm1405_vm0, %v4108_v57, 0.0 }
 0x300   : > { %vm1398_vm9 = vcmp.eq.s32.totalorder %v3329_v63, %v1324_v9  ;;  %vm1399_vm10 = vcmp.eq.s32.totalorder %v3336_v39, %v1324_v9  ;;  %1541 = vadd.xlane.f32.xlu0 %v1540_v2  ;;  %1108 = vadd.xlane.f32.xlu1 %v1107_v43  ;;  %v1110_v9 = vadd.f32 %v2276_v47, %v2274_v23  ;;  %v1029_v56 = vmul.f32 1.442695, %v904_v46  ;;  %v2282_v23 = vpop.eup %2281 }
 0x301   : > { %v1462_v29 = vsel %vm1398_vm9, %v4098_v62, 0.0  ;;  %v1463_v41 = vsel %vm1399_vm10, %v4099_v50, 0.0  ;;  %v4126_v62 = vld [vmem:[#allocation46_spill] sm:$0xff]  ;;  %v1464_v43 = vsel %vm1400_vm11, %v4101_v4, 0.0  ;;  %v1465_v47 = vsel %vm1401_vm12, %v4102_v55, 0.0  ;;  %v2284_v6 = vpop.eup %2283 }
 0x302   : > { %v906_v53 = vsub.f32 %v4126_v62, %v3501_v61  ;;  %v1546_v50 = vadd.f32 %v1463_v41, %v1462_v29  ;;  %2295 = vpow2.f32 %v1029_v56  ;;  %v1116_v41 = vadd.f32 %v2284_v6, %v2282_v23 }
 0x303   : > { %v1330_v2 = vpop.permute.xlu0 %1329  ;;  %v2286_v29 = vpop.eup %2285  ;;  %2297 = vpow2.f32 %v1031_v49  ;;  %v1555_v42 = vadd.f32 %v1469_v20, %v1468_v44 }
 0x304   : > { %1544 = vadd.xlane.f32.xlu0 %v1543_v54  ;;  %1111 = vadd.xlane.f32.xlu1 %v1110_v9  ;;  %vm1402_vm13 = vcmp.eq.s32.totalorder %v3329_v63, %v1330_v2  ;;  %vm1403_vm14 = vcmp.eq.s32.totalorder %v3336_v39, %v1330_v2  ;;  %v1033_v46 = vmul.f32 1.442695, %v906_v53  ;;  %v1549_v54 = vadd.f32 %v1465_v47, %v1464_v43  ;;  %v2288_v17 = vpop.eup %2287  ;;  %v1345_v9 = vpop.permute.xlu1 %1344 }
 0x305   : > { %v1466_v4 = vsel %vm1402_vm13, %v4104_v59, 0.0  ;;  %v1467_v55 = vsel %vm1403_vm14, %v4105_v19, 0.0  ;;  %v2290_v21 = vpop.eup %2289  ;;  %v1119_v56 = vadd.f32 %v2288_v17, %v2286_v29  ;;  %vm1412_vm11 = vcmp.eq.s32.totalorder %v3329_v63, %v1345_v9 }
 0x306   : > { %2299 = vpow2.f32 %v1033_v46  ;;  %v1552_v2 = vadd.f32 %v1467_v55, %v1466_v4  ;;  %v1472_v4 = vsel %vm1408_vm7, %v4113_v26, 0.0  ;;  %v1473_v55 = vsel %vm1409_vm8, %v4114_v35, 0.0 }
 0x307   : > { %v1336_v12 = vpop.permute.xlu0 %1335  ;;  %vm1413_vm12 = vcmp.eq.s32.totalorder %v3336_v39, %v1345_v9  ;;  %v1476_v26 = vsel %vm1412_vm11, %v4117_v58, 0.0  ;;  %2301 = vlog2.f32 %v3513_v28 }
 0x308   : > { %1547 = vadd.xlane.f32.xlu0 %v1546_v50  ;;  %1114 = vadd.xlane.f32.xlu1 %v1113_v27  ;;  %v2292_v19 = vpop.eup %2291  ;;  %vm1406_vm1 = vcmp.eq.s32.totalorder %v3329_v63, %v1336_v12  ;;  %vm1407_vm2 = vcmp.eq.s32.totalorder %v3336_v39, %v1336_v12  ;;  %v1351_v50 = vpop.permute.xlu1 %1350  ;;  %v1477_v35 = vsel %vm1413_vm12, %v4118_v32, 0.0  ;;  %2303 = vlog2.f32 %v3509_v18 }
 0x309   : > { %v2294_v53 = vpop.eup %2293  ;;  %v1470_v23 = vsel %vm1406_vm1, %v4110_v60, 0.0  ;;  %v1471_v43 = vsel %vm1407_vm2, %v4111_v38, 0.0  ;;  %v1122_v47 = vadd.f32 %v2292_v19, %v2290_v21  ;;  %vm1416_vm13 = vcmp.eq.s32.totalorder %v3329_v63, %v1351_v50 }
 0x30a   : > { %v1558_v27 = vadd.f32 %v1471_v43, %v1470_v23  ;;  %vm1417_vm14 = vcmp.eq.s32.totalorder %v3336_v39, %v1351_v50  ;;  %v1567_v9 = vadd.f32 %v1477_v35, %v1476_v26  ;;  %v1480_v21 = vsel %vm1416_vm13, %v4121_v33, 0.0 }
 0x30b   : > { %v1342_v59 = vpop.permute.xlu0 %1341  ;;  %v1481_v44 = vsel %vm1417_vm14, %v4122_v5, 0.0  ;;  %2305 = vlog2.f32 %v3521_v45 }
 0x30c   : > { %1550 = vadd.xlane.f32.xlu0 %v1549_v54  ;;  %1117 = vadd.xlane.f32.xlu1 %v1116_v41  ;;  %v2296_v51 = vpop.eup %2295  ;;  %vm1410_vm3 = vcmp.eq.s32.totalorder %v3329_v63, %v1342_v59  ;;  %vm1411_vm4 = vcmp.eq.s32.totalorder %v3336_v39, %v1342_v59  ;;  %v1354_v60 = vpop.permute.xlu1 %1353  ;;  %v1561_v41 = vadd.f32 %v1473_v55, %v1472_v4 }
 0x30d   : > { %v2298_v6 = vpop.eup %2297  ;;  %v1474_v49 = vsel %vm1410_vm3, %v4115_v30, 0.0  ;;  %v1475_v12 = vsel %vm1411_vm4, %v4116_v3, 0.0  ;;  %v1125_v46 = vadd.f32 %v2296_v51, %v2294_v53  ;;  %vm1418_vm9 = vcmp.eq.s32.totalorder %v3329_v63, %v1354_v60  ;;  %v4128_v53 = vld [vmem:[#allocation47_spill] sm:$0xff]  ;;  %v4129_v51 = vld [vmem:[#allocation50_spill] sm:$0xff] }
 0x30e   : > { %v1564_v38 = vadd.f32 %v1475_v12, %v1474_v49  ;;  %vm1419_vm10 = vcmp.eq.s32.totalorder %v3336_v39, %v1354_v60  ;;  %v1573_v58 = vadd.f32 %v1481_v44, %v1480_v21  ;;  %vm1745_vm3 = vcmask 7168  }
 0x30f   : > { %v1348_v57 = vpop.permute.xlu0 %1347 }
 0x310   : > { %1553 = vadd.xlane.f32.xlu0 %v1552_v2  ;;  %1120 = vadd.xlane.f32.xlu1 %v1119_v56  ;;  %v2300_v54 = vpop.eup %2299  ;;  %vm1414_vm5 = vcmp.eq.s32.totalorder %v3329_v63, %v1348_v57  ;;  %vm1415_vm6 = vcmp.eq.s32.totalorder %v3336_v39, %v1348_v57  ;;  %v4127_v56 = vld [vmem:[#allocation15_spill] sm:$0xff] }
 0x311   : > { %v1478_v30 = vsel %vm1414_vm5, %v4119_v22, 0.0  ;;  %v1479_v3 = vsel %vm1415_vm6, %v4120_v48, 0.0  ;;  %v1128_v29 = vadd.f32 %v2300_v54, %v2298_v6  ;;  %v1482_v22 = vsel %vm1418_vm9, %v4123_v36, 0.0  ;;  %v2302_v20 = vpop.eup %2301 }
 0x312   : > { %v1570_v40 = vadd.f32 %v1479_v3, %v1478_v30  ;;  %v1483_v48 = vsel %vm1419_vm10, %v4124_v31, 0.0  ;;  %v1617_v19 = vadd.s32 8, %v4127_v56  ;;  %v1618_v49 = vadd.s32 16, %v4127_v56 }
 0x313   : > { %v1576_v17 = vadd.f32 %v1483_v48, %v1482_v22  ;;  %v1357_v2 = vpop.permute.xlu0 %1356  ;;  %v1620_v26 = vadd.s32 32, %v4127_v56  ;;  %v1621_v44 = vadd.s32 40, %v4127_v56 }
 0x314   : > { %1556 = vadd.xlane.f32.xlu0 %v1555_v42  ;;  %1123 = vadd.xlane.f32.xlu1 %v1122_v47  ;;  %vm1420_vm15 = vcmp.eq.s32.totalorder %v3329_v63, %v1357_v2  ;;  %vm1421_vm0 = vcmp.eq.s32.totalorder %v3336_v39, %v1357_v2  ;;  %v1132_v63 = vmul.f32 0.6931472, %v2302_v20  ;;  %v3637_v39 = vstv %s1990_s21 }
 0x315   : > { %v1484_v32 = vsel %vm1420_vm15, %v4125_v8, 0.0  ;;  %v1485_v36 = vsel %vm1421_vm0, %v4126_v62, 0.0  ;;  %v2304_v8 = vpop.eup %2303  ;;  %v1649_v28 = vadd.s32 %v3637_v39, %v4127_v56  ;;  %v1650_v45 = vadd.s32 %v3637_v39, %v1617_v19 }
 0x316   : > { %v1579_v31 = vadd.f32 %v1485_v36, %v1484_v32  ;;  %v1134_v18 = vmul.f32 0.6931472, %v2304_v8  ;;  %v1195_v50 = vadd.f32 %v1132_v63, %v4128_v53  ;;  %v4131_v63 = vld [vmem:[#allocation53_spill] sm:$0xff]  ;;  %v4132_v53 = vld [vmem:[#allocation56_spill] sm:$0xff] }
 0x317   : > { %vm1681_vm1 = vcmp.lt.s32.totalorder %v1649_v28, 300  ;;  %vm1682_vm2 = vcmp.lt.s32.totalorder %v1650_v45, 300  ;;  %v1654_v28 = vadd.s32 %v3637_v39, %v1621_v44  ;;  %v4133_v45 = vld [vmem:[#allocation51_spill] sm:$0xff] }
 0x318   : > { %1559 = vadd.xlane.f32.xlu0 %v1558_v27  ;;  %1126 = vadd.xlane.f32.xlu1 %v1125_v46  ;;  %v1196_v57 = vadd.f32 %v1134_v18, %v4129_v51  ;;  %v2306_v27 = vpop.eup %2305 }
 0x319   : > { %v1136_v54 = vmul.f32 0.6931472, %v2306_v27  ;;  %vm1686_vm7 = vcmp.lt.s32.totalorder %v1654_v28, 300 }
 0x31c   : > { %1565 = vadd.xlane.f32.xlu0 %v1564_v38  ;;  %1129 = vadd.xlane.f32.xlu1 %v1128_v29  ;;  %v1651_v29 = vadd.s32 %v3637_v39, %v1618_v49 }
 0x31e   : > { %vm1683_vm4 = vcmp.lt.s32.totalorder %v1651_v29, 300 }
 0x320   : > { %1571 = vadd.xlane.f32.xlu0 %v1570_v40  ;;  %1562 = vadd.xlane.f32.xlu1 %v1561_v41  ;;  %v4130_v41 = vld [vmem:[#allocation49_spill] sm:$0xff] }
 0x321   : > { %v1197_v22 = vadd.f32 %v1136_v54, %v4130_v41 }
 0x324   : > { %1577 = vadd.xlane.f32.xlu0 %v1576_v17  ;;  %1568 = vadd.xlane.f32.xlu1 %v1567_v9  ;;  %v1619_v17 = vadd.s32 24, %v4127_v56 }
 0x326   : > { %v1652_v20 = vadd.s32 %v3637_v39, %v1619_v17 }
 0x328   : > { %1574 = vadd.xlane.f32.xlu1 %v1573_v58  ;;  %vm1684_vm6 = vcmp.lt.s32.totalorder %v1652_v20, 300 }
 0x32c   : > { %1580 = vadd.xlane.f32.xlu1 %v1579_v31  ;;  %v1653_v31 = vadd.s32 %v3637_v39, %v1620_v26 }
 0x32e   : > { %vm1685_vm5 = vcmp.lt.s32.totalorder %v1653_v31, 300 }
 0x331   : > { %v1049_v33 = vpop.xlane.xlu1 %1048 }
 0x332   : > { %2307 = vlog2.f32 %v1049_v33 }
 0x333   : > { %2309 = vlog2.f32 %v3523_v16 }
 0x335   : > { %v1052_v5 = vpop.xlane.xlu1 %1051 }
 0x336   : > { %2311 = vlog2.f32 %v1052_v5 }
 0x339   : > { %v3633_v59 = vpop.xlane.xlu1 %1054 }
 0x33a   : > { %2313 = vlog2.f32 %v3633_v59 }
 0x33c   : > { %v2308_v55 = vpop.eup %2307 }
 0x33d   : > { %v3639_v62 = vpop.xlane.xlu1 %1060  ;;  %v2310_v40 = vpop.eup %2309  ;;  %v1140_v2 = vmul.f32 0.6931472, %v2308_v55 }
 0x33e   : > { %v1138_v58 = vmul.f32 0.6931472, %v2310_v40 }
 0x33f   : > { %v1199_v8 = vadd.f32 %v1140_v2, %v4131_v63 }
 0x340   : > { %v3644_v42 = vpop.xlane.xlu0 %1057  ;;  %v2312_v48 = vpop.eup %2311 }
 0x341   : > { %v1488_v23 = vpop.xlane.xlu1 %1487  ;;  %v1142_v32 = vmul.f32 0.6931472, %v2312_v48  ;;  %2315 = vlog2.f32 %v3644_v42  ;;  %v1623_v42 = vadd.s32 56, %v4127_v56 }
 0x342   : > { %v1582_v43 = vsub.f32 %v1195_v50, %v1488_v23  ;;  %2317 = vlog2.f32 %v3639_v62  ;;  %v1625_v62 = vadd.s32 72, %v4127_v56 }
 0x343   : > { %v1200_v50 = vadd.f32 %v1142_v32, %v4132_v53  ;;  %v1656_v53 = vadd.s32 %v3637_v39, %v1623_v42 }
 0x344   : > { %v1500_v47 = vpop.xlane.xlu0 %1499  ;;  %v1713_v12 = vsel %vm1681_vm1, %v1582_v43, 0.0  ;;  %v1198_v43 = vadd.f32 %v1138_v58, %v4133_v45  ;;  %v2314_v17 = vpop.eup %2313  ;;  %v1622_v58 = vadd.s32 48, %v4127_v56 }
 0x345   : > { %v1491_v6 = vpop.xlane.xlu1 %1490  ;;  %v1746_v30 = vsel %vm1745_vm3, %v1713_v12, 0.0  ;;  %v1586_v18 = vsub.f32 %v1199_v8, %v1500_v47  ;;  %v1144_v32 = vmul.f32 0.6931472, %v2314_v17  ;;  %vm1688_vm9 = vcmp.lt.s32.totalorder %v1656_v53, 300 }
 0x346   : > { %v1583_v46 = vsub.f32 %v1196_v57, %v1491_v6  ;;  %v1655_v31 = vadd.s32 %v3637_v39, %v1622_v58 }
 0x347   : > { %v1717_v6 = vsel %vm1685_vm5, %v1586_v18, 0.0 }
 0x348   : > { %v1714_v60 = vsel %vm1682_vm2, %v1583_v46, 0.0  ;;  %v1503_v38 = vpop.xlane.xlu0 %1502  ;;  %vm1687_vm8 = vcmp.lt.s32.totalorder %v1655_v31, 300 }
 0x349   : > { %v1747_v16 = vsel %vm1745_vm3, %v1714_v60, 0.0  ;;  %v1064_v3 = vpop.xlane.xlu1 %1063  ;;  %v1587_v57 = vsub.f32 %v1200_v50, %v1503_v38 }
 0x34a   : > { %v1748_v4 = vadd.f32 %v1747_v16, %v1746_v30  ;;  %v1753_v30 = vsel %vm1745_vm3, %v1717_v6, 0.0  ;;  %2319 = vlog2.f32 %v1064_v3  ;;  %v4134_v3 = vld [vmem:[#allocation57_spill] sm:$0xff] }
 0x34b   : > { %v1718_v54 = vsel %vm1686_vm7, %v1587_v57, 0.0  ;;  %v1201_v20 = vadd.f32 %v1144_v32, %v4134_v3  ;;  %v1629_v32 = vadd.s32 104, %v4127_v56 }
 0x34c   : > { %v3657_v21 = vpop.xlane.xlu0 %1505  ;;  %v1755_v29 = vsel %vm1745_vm3, %v1718_v54, 0.0 }
 0x34d   : > { %v1494_v35 = vpop.xlane.xlu1 %1493  ;;  %v1588_v18 = vsub.f32 %v1201_v20, %v3657_v21  ;;  %v1630_v20 = vadd.s32 112, %v4127_v56 }
 0x34e   : > { %v1584_v9 = vsub.f32 %v1197_v22, %v1494_v35 }
 0x350   : > { %v1715_v36 = vsel %vm1683_vm4, %v1584_v9, 0.0  ;;  %v3666_v23 = vpop.xlane.xlu0 %1508  ;;  %v2316_v9 = vpop.eup %2315 }
 0x351   : > { %v1749_v33 = vsel %vm1745_vm3, %v1715_v36, 0.0  ;;  %v1067_v5 = vpop.xlane.xlu1 %1066  ;;  %v1146_v59 = vmul.f32 0.6931472, %v2316_v9  ;;  %v2318_v8 = vpop.eup %2317 }
 0x352   : > { %v1750_v19 = vadd.f32 %v1749_v33, %v1748_v4  ;;  %2321 = vlog2.f32 %v1067_v5  ;;  %v1624_v33 = vadd.s32 64, %v4127_v56  ;;  %v4135_v5 = vld [vmem:[#allocation60_spill] sm:$0xff]  ;;  %v1148_v57 = vmul.f32 0.6931472, %v2318_v8 }
 0x353   : > { %v1631_v8 = vadd.s32 120, %v4127_v56 }
 0x354   : > { %v3670_v47 = vpop.xlane.xlu0 %1511  ;;  %v2320_v50 = vpop.eup %2319  ;;  %v1657_v45 = vadd.s32 %v3637_v39, %v1624_v33 }
 0x355   : > { %v1497_v51 = vpop.xlane.xlu1 %1496  ;;  %v1150_v54 = vmul.f32 0.6931472, %v2320_v50 }
 0x356   : > { %v1585_v27 = vsub.f32 %v1198_v43, %v1497_v51  ;;  %v3702_v43 = vadd.s32 %v3637_v39, %v1625_v62  ;;  %v1626_v51 = vadd.s32 80, %v4127_v56  ;;  %vm1689_vm10 = vcmp.lt.s32.totalorder %v1657_v45, 300  ;;  %v4137_v62 = vld [vmem:[#allocation63_spill] sm:$0xff] }
 0x357   : > { %v1204_v3 = vadd.f32 %v1150_v54, %v4137_v62 }
 0x358   : > { %v1716_v49 = vsel %vm1684_vm6, %v1585_v27, 0.0  ;;  %v3676_v38 = vpop.xlane.xlu0 %1514  ;;  %v1627_v27 = vadd.s32 88, %v4127_v56  ;;  %vm1690_vm11 = vcmp.lt.s32.totalorder %v3702_v43, 300  ;;  %v1634_v43 = vadd.s32 144, %v4127_v56 }
 0x359   : > { %v1751_v12 = vsel %vm1745_vm3, %v1716_v49, 0.0  ;;  %v1070_v46 = vpop.xlane.xlu1 %1069 }
 0x35a   : > { %v1752_v60 = vadd.f32 %v1751_v12, %v1750_v19  ;;  %2323 = vlog2.f32 %v1070_v46  ;;  %v1202_v19 = vadd.f32 %v1146_v59, %v4135_v5 }
 0x35c   : > { %v1754_v16 = vadd.f32 %v1753_v30, %v1752_v60  ;;  %v3678_v22 = vpop.xlane.xlu0 %1517  ;;  %v2322_v49 = vpop.eup %2321  ;;  %v1589_v12 = vsub.f32 %v1202_v19, %v3666_v23  ;;  %v1719_v60 = vsel %vm1687_vm8, %v1588_v18, 0.0  ;;  %v3711_v30 = vadd.s32 %v3637_v39, %v1626_v51 }
 0x35d   : > { %v1073_v4 = vpop.xlane.xlu1 %1072  ;;  %v3716_v23 = vadd.s32 %v3637_v39, %v1627_v27  ;;  %v1591_v27 = vsub.f32 %v1204_v3, %v3676_v38 }
 0x35e   : > { %v3674_v55 = vadd.f32 %v1755_v29, %v1754_v16  ;;  %2325 = vlog2.f32 %v1073_v4  ;;  %v1628_v16 = vadd.s32 96, %v4127_v56  ;;  %v1152_v29 = vmul.f32 0.6931472, %v2322_v49  ;;  %v4136_v4 = vld [vmem:[#allocation61_spill] sm:$0xff] }
 0x35f   : > { %v1720_v9 = vsel %vm1688_vm9, %v1589_v12, 0.0  ;;  %vm1691_vm12 = vcmp.lt.s32.totalorder %v3711_v30, 300  ;;  %vm1692_vm13 = vcmp.lt.s32.totalorder %v3716_v23, 300  ;;  %v3743_v49 = vadd.s32 %v3637_v39, %v1630_v20 }
 0x360   : > { %v3682_v26 = vpop.xlane.xlu0 %1520  ;;  %v1205_v19 = vadd.f32 %v1152_v29, %v3333_v7  ;;  %v1662_v7 = vadd.s32 %v3637_v39, %v1629_v32  ;;  %v3746_v12 = vadd.s32 %v3637_v39, %v1631_v8 }
 0x361   : > { %v1076_v40 = vpop.xlane.xlu1 %1075  ;;  %vm1695_vm0 = vcmp.lt.s32.totalorder %v3743_v49, 300 }
 0x362   : > { %2327 = vlog2.f32 %v1076_v40  ;;  %v1203_v40 = vadd.f32 %v1148_v57, %v4136_v4  ;;  %v1592_v54 = vsub.f32 %v1205_v19, %v3678_v22  ;;  %vm1694_vm15 = vcmp.lt.s32.totalorder %v1662_v7, 300 }
 0x363   : > { %vm1696_vm1 = vcmp.lt.s32.totalorder %v3746_v12, 300  ;;  %v1636_v19 = vadd.s32 160, %v4127_v56 }
 0x364   : > { %v3685_v44 = vpop.xlane.xlu0 %1523  ;;  %v2324_v46 = vpop.eup %2323  ;;  %v1590_v33 = vsub.f32 %v1203_v40, %v3670_v47  ;;  %v1759_v47 = vsel %vm1745_vm3, %v1720_v9, 0.0 }
 0x365   : > { %v1079_v41 = vpop.xlane.xlu1 %1078  ;;  %v1154_v58 = vmul.f32 0.6931472, %v2324_v46 }
 0x366   : > { %2329 = vlog2.f32 %v1079_v41  ;;  %v1721_v57 = vsel %vm1689_vm10, %v1590_v33, 0.0 }
 0x367   : > { %v1206_v53 = vadd.f32 %v1154_v58, %v3338_v10  ;;  %v1633_v10 = vadd.s32 136, %v4127_v56 }
 0x368   : > { %v3693_v63 = vpop.xlane.xlu0 %1526  ;;  %v2326_v17 = vpop.eup %2325 }
 0x369   : > { %v1082_v48 = vpop.xlane.xlu1 %1081  ;;  %v1156_v5 = vmul.f32 0.6931472, %v2326_v17  ;;  %v1593_v29 = vsub.f32 %v1206_v53, %v3682_v26  ;;  %v3765_v9 = vadd.s32 %v3637_v39, %v1633_v10 }
 0x36a   : > { %2331 = vlog2.f32 %v1082_v48  ;;  %v1757_v48 = vsel %vm1745_vm3, %v1719_v60, 0.0 }
 0x36b   : > { %v1758_v31 = vadd.f32 %v1757_v48, %v3674_v55  ;;  %v1632_v55 = vadd.s32 128, %v4127_v56  ;;  %v1207_v45 = vadd.f32 %v1156_v5, %v3364_v15  ;;  %v1722_v15 = vsel %vm1690_vm11, %v1591_v27, 0.0 }
 0x36c   : > { %v2328_v42 = vpop.eup %2327  ;;  %v1763_v32 = vsel %vm1745_vm3, %v1722_v15, 0.0  ;;  %vm1698_vm4 = vcmp.lt.s32.totalorder %v3765_v9, 300  ;;  %v1637_v15 = vadd.s32 168, %v4127_v56 }
 0x36d   : > { %v1085_v35 = vpop.xlane.xlu1 %1084  ;;  %v1760_v51 = vadd.f32 %v1759_v47, %v1758_v31  ;;  %v3753_v38 = vadd.s32 %v3637_v39, %v1632_v55 }
 0x36e   : > { %2333 = vlog2.f32 %v1085_v35  ;;  %v3727_v35 = vadd.s32 %v3637_v39, %v1628_v16  ;;  %v1761_v16 = vsel %vm1745_vm3, %v1721_v57, 0.0 }
 0x36f   : > { %v1762_v48 = vadd.f32 %v1761_v16, %v1760_v51  ;;  %vm1697_vm2 = vcmp.lt.s32.totalorder %v3753_v38, 300 }
 0x370   : > { %vm1693_vm14 = vcmp.lt.s32.totalorder %v3727_v35, 300  ;;  %v1667_v35 = vadd.s32 %v3637_v39, %v1634_v43 }
 0x371   : > { %v1088_v2 = vpop.xlane.xlu1 %1087  ;;  %v1764_v3 = vadd.f32 %v1763_v32, %v1762_v48 }
 0x372   : > { %2335 = vlog2.f32 %v1088_v2  ;;  %v1158_v2 = vmul.f32 0.6931472, %v2328_v42  ;;  %v1724_v42 = vsel %vm1692_vm13, %v1593_v29, 0.0  ;;  %vm1699_vm5 = vcmp.lt.s32.totalorder %v1667_v35, 300  ;;  %v4140_v35 = vld [vmem:[#allocation59_spill] sm:$0xff] }
 0x373   : > { %v1767_v23 = vsel %vm1745_vm3, %v1724_v42, 0.0 }
 0x374   : > { %v1208_v4 = vadd.f32 %v1158_v2, %v3378_v25  ;;  %v1723_v25 = vsel %vm1691_vm12, %v1592_v54, 0.0  ;;  %v1669_v54 = vadd.s32 %v3637_v39, %v1636_v19  ;;  %v1639_v19 = vadd.s32 184, %v4127_v56 }
 0x375   : > { %v1091_v36 = vpop.xlane.xlu1 %1090  ;;  %v1765_v20 = vsel %vm1745_vm3, %v1723_v25, 0.0  ;;  %v1638_v25 = vadd.s32 176, %v4127_v56 }
 0x376   : > { %2337 = vlog2.f32 %v1091_v36  ;;  %v2330_v36 = vpop.eup %2329  ;;  %v1595_v31 = vsub.f32 %v1208_v4, %v3693_v63  ;;  %v1766_v57 = vadd.f32 %v1765_v20, %v1764_v3  ;;  %vm1701_vm7 = vcmp.lt.s32.totalorder %v1669_v54, 300 }
 0x377   : > { %v2332_v46 = vpop.eup %2331  ;;  %v1160_v22 = vmul.f32 0.6931472, %v2330_v36 }
 0x378   : > { %v2334_v17 = vpop.eup %2333 }
 0x379   : > { %v3696_v28 = vpop.xlane.xlu1 %1093  ;;  %v1164_v33 = vmul.f32 0.6931472, %v2334_v17 }
 0x37a   : > { %2339 = vlog2.f32 %v3696_v28  ;;  %v1162_v28 = vmul.f32 0.6931472, %v2332_v46 }
 0x37c   : > { %v2336_v26 = vpop.eup %2335  ;;  %v1210_v5 = vadd.f32 %v1162_v28, %v3440_v0 }
 0x37d   : > { %v3706_v6 = vpop.xlane.xlu0 %1529  ;;  %v1097_v21 = vpop.xlane.xlu1 %1096  ;;  %v1166_v8 = vmul.f32 0.6931472, %v2336_v26 }
 0x37e   : > { %2341 = vlog2.f32 %v1097_v21  ;;  %v1594_v21 = vsub.f32 %v1207_v45, %v3685_v44  ;;  %v1209_v44 = vadd.f32 %v1160_v22, %v3421_v24  ;;  %v1726_v24 = vsel %vm1694_vm15, %v1595_v31, 0.0 }
 0x37f   : > { %v1212_v7 = vadd.f32 %v1166_v8, %v4088_v34  ;;  %v1671_v8 = vadd.s32 %v3637_v39, %v1638_v25  ;;  %v1644_v25 = vadd.s32 224, %v4127_v56 }
 0x380   : > { %v2338_v30 = vpop.eup %2337  ;;  %v1725_v63 = vsel %vm1693_vm14, %v1594_v21, 0.0  ;;  %v1596_v55 = vsub.f32 %v1209_v44, %v3706_v6 }
 0x381   : > { %v3718_v41 = vpop.xlane.xlu0 %1532  ;;  %v1100_v59 = vpop.xlane.xlu1 %1099  ;;  %v1168_v2 = vmul.f32 0.6931472, %v2338_v30  ;;  %v1769_v6 = vsel %vm1745_vm3, %v1725_v63, 0.0  ;;  %v1670_v30 = vadd.s32 %v3637_v39, %v1637_v15  ;;  %vm1703_vm9 = vcmp.lt.s32.totalorder %v1671_v8, 300 }
 0x382   : > { %2343 = vlog2.f32 %v1100_v59  ;;  %v1635_v59 = vadd.s32 152, %v4127_v56  ;;  %v1597_v53 = vsub.f32 %v1210_v5, %v3718_v41  ;;  %v1768_v41 = vadd.f32 %v1767_v23, %v1766_v57 }
 0x383   : > { %v1727_v46 = vsel %vm1695_vm0, %v1596_v55, 0.0  ;;  %v4139_v55 = vld [vmem:[#allocation58_spill] sm:$0xff]  ;;  %vm1702_vm8 = vcmp.lt.s32.totalorder %v1670_v30, 300 }
 0x384   : > { %v2340_v51 = vpop.eup %2339  ;;  %v1668_v10 = vadd.s32 %v3637_v39, %v1635_v59  ;;  %v1728_v29 = vsel %vm1696_vm1, %v1597_v53, 0.0  ;;  %v1770_v17 = vadd.f32 %v1769_v6, %v1768_v41  ;;  %v1773_v49 = vsel %vm1745_vm3, %v1727_v46, 0.0 }
 0x385   : > { %v3733_v18 = vpop.xlane.xlu0 %1535  ;;  %v1103_v50 = vpop.xlane.xlu1 %1102  ;;  %v1170_v16 = vmul.f32 0.6931472, %v2340_v51 }
 0x386   : > { %2345 = vlog2.f32 %v1103_v50  ;;  %v1211_v50 = vadd.f32 %v1164_v33, %v3240_v52  ;;  %v1771_v52 = vsel %vm1745_vm3, %v1726_v24, 0.0  ;;  %vm1700_vm6 = vcmp.lt.s32.totalorder %v1668_v10, 300  ;;  %v4138_v33 = vld [vmem:[#allocation55_spill] sm:$0xff] }
 0x387   : > { %v1772_v26 = vadd.f32 %v1771_v52, %v1770_v17  ;;  %v1214_v32 = vadd.f32 %v1170_v16, %v4094_v14  ;;  %v4142_v17 = vld [vmem:[#allocation64_spill] sm:$0xff] }
 0x388   : > { %v2342_v27 = vpop.eup %2341  ;;  %v1598_v36 = vsub.f32 %v1211_v50, %v3733_v18  ;;  %v1213_v18 = vadd.f32 %v1168_v2, %v4091_v13 }
 0x389   : > { %v3755_v60 = vpop.xlane.xlu0 %1538  ;;  %v1106_v40 = vpop.xlane.xlu1 %1105  ;;  %v1172_v48 = vmul.f32 0.6931472, %v2342_v27  ;;  %v1774_v31 = vadd.f32 %v1773_v49, %v1772_v26  ;;  %v1642_v49 = vadd.s32 208, %v4127_v56 }
 0x38a   : > { %2347 = vlog2.f32 %v1106_v40  ;;  %v1599_v4 = vsub.f32 %v1212_v7, %v3755_v60  ;;  %v1729_v22 = vsel %vm1697_vm2, %v1598_v36, 0.0  ;;  %v1775_v60 = vsel %vm1745_vm3, %v1728_v29, 0.0 }
 0x38b   : > { %v1776_v20 = vadd.f32 %v1775_v60, %v1774_v31  ;;  %v1672_v36 = vadd.s32 %v3637_v39, %v1639_v19 }
 0x38c   : > { %v2344_v40 = vpop.eup %2343  ;;  %v1730_v43 = vsel %vm1698_vm4, %v1599_v4, 0.0  ;;  %vm1819_vm4 = vcmask 0  }
 0x38d   : > { %v3772_v58 = vpop.xlane.xlu0 %1541  ;;  %v1109_v62 = vpop.xlane.xlu1 %1108  ;;  %v1174_v21 = vmul.f32 0.6931472, %v2344_v40  ;;  %v1779_v14 = vsel %vm1745_vm3, %v1730_v43, 0.0  ;;  %vm1704_vm10 = vcmp.lt.s32.totalorder %v1672_v36, 300 }
 0x38e   : > { %2349 = vlog2.f32 %v1109_v62  ;;  %v1600_v28 = vsub.f32 %v1213_v18, %v3772_v58  ;;  %v1777_v58 = vsel %vm1745_vm3, %v1729_v22, 0.0  ;;  %v1215_v62 = vadd.f32 %v1172_v48, %v4138_v33 }
 0x38f   : > { %v1216_v24 = vadd.f32 %v1174_v21, %v4139_v55  ;;  %v1778_v53 = vadd.f32 %v1777_v58, %v1776_v20  ;;  %v1641_v22 = vadd.s32 200, %v4127_v56  ;;  %v1677_v20 = vadd.s32 %v3637_v39, %v1644_v25 }
 0x390   : > { %v2346_v12 = vpop.eup %2345  ;;  %v1731_v44 = vsel %vm1699_vm5, %v1600_v28, 0.0  ;;  %v1646_v55 = vadd.s32 240, %v4127_v56 }
 0x391   : > { %v3787_v47 = vpop.xlane.xlu0 %1544  ;;  %v1112_v0 = vpop.xlane.xlu1 %1111  ;;  %v1176_v3 = vmul.f32 0.6931472, %v2346_v12  ;;  %v1781_v50 = vsel %vm1745_vm3, %v1731_v44, 0.0  ;;  %v1780_v6 = vadd.f32 %v1779_v14, %v1778_v53  ;;  %v1643_v14 = vadd.s32 216, %v4127_v56 }
 0x392   : > { %v1601_v59 = vsub.f32 %v1214_v32, %v3787_v47  ;;  %v1640_v47 = vadd.s32 192, %v4127_v56  ;;  %vm1709_vm14 = vcmp.lt.s32.totalorder %v1677_v20, 300 }
 0x393   : > { %v1217_v27 = vadd.f32 %v1176_v3, %v4140_v35  ;;  %v1782_v29 = vadd.f32 %v1781_v50, %v1780_v6  ;;  %v1674_v3 = vadd.s32 %v3637_v39, %v1641_v22  ;;  %v4143_v50 = vld [vmem:[#allocation65_spill] sm:$0xff] }
 0x394   : > { %v2348_v42 = vpop.eup %2347  ;;  %v1732_v51 = vsel %vm1700_vm6, %v1601_v59, 0.0  ;;  %v1673_v10 = vadd.s32 %v3637_v39, %v1640_v47 }
 0x395   : > { %v1548_v45 = vpop.xlane.xlu0 %1547  ;;  %v1115_v34 = vpop.xlane.xlu1 %1114  ;;  %v1178_v23 = vmul.f32 0.6931472, %v2348_v42  ;;  %v1783_v4 = vsel %vm1745_vm3, %v1732_v51, 0.0  ;;  %vm1706_vm13 = vcmp.lt.s32.totalorder %v1674_v3, 300 }
 0x396   : > { %2351 = vlog2.f32 %v1115_v34  ;;  %v1602_v63 = vsub.f32 %v1215_v62, %v1548_v45  ;;  %v4141_v45 = vld [vmem:[#allocation62_spill] sm:$0xff]  ;;  %v1784_v12 = vadd.f32 %v1783_v4, %v1782_v29  ;;  %vm1705_vm11 = vcmp.lt.s32.totalorder %v1673_v10, 300 }
 0x397   : > { %2353 = vlog2.f32 %v1112_v0  ;;  %v1218_v16 = vadd.f32 %v1178_v23, %v4141_v45  ;;  %v1675_v62 = vadd.s32 %v3637_v39, %v1642_v49 }
 0x398   : > { %v2350_v9 = vpop.eup %2349  ;;  %v1733_v41 = vsel %vm1701_vm7, %v1602_v63, 0.0 }
 0x399   : > { %v1551_v13 = vpop.xlane.xlu0 %1550  ;;  %v1118_v38 = vpop.xlane.xlu1 %1117  ;;  %v1180_v0 = vmul.f32 0.6931472, %v2350_v9  ;;  %v1785_v15 = vsel %vm1745_vm3, %v1733_v41, 0.0  ;;  %vm1707_vm12 = vcmp.lt.s32.totalorder %v1675_v62, 300 }
 0x39a   : > { %2355 = vlog2.f32 %v1118_v38  ;;  %v1603_v57 = vsub.f32 %v1216_v24, %v1551_v13  ;;  %v1786_v38 = vadd.f32 %v1785_v15, %v1784_v12  ;;  %v1645_v24 = vadd.s32 232, %v4127_v56 }
 0x39b   : > { %v1219_v48 = vadd.f32 %v1180_v0, %v4142_v17 }
 0x39c   : > { %v1734_v34 = vsel %vm1702_vm8, %v1603_v57, 0.0 }
 0x39d   : > { %v1554_v5 = vpop.xlane.xlu0 %1553  ;;  %v1121_v2 = vpop.xlane.xlu1 %1120  ;;  %v1787_v43 = vsel %vm1745_vm3, %v1734_v34, 0.0 }
 0x39e   : > { %2357 = vlog2.f32 %v1121_v2  ;;  %v1604_v52 = vsub.f32 %v1217_v27, %v1554_v5  ;;  %v1788_v44 = vadd.f32 %v1787_v43, %v1786_v38  ;;  %v1676_v27 = vadd.s32 %v3637_v39, %v1643_v14 }
 0x3a0   : > { %v2352_v18 = vpop.eup %2351  ;;  %v1735_v26 = vsel %vm1703_vm9, %v1604_v52, 0.0  ;;  %v1679_v52 = vadd.s32 %v3637_v39, %v1646_v55  ;;  %vm1708_vm15 = vcmp.lt.s32.totalorder %v1676_v27, 300 }
 0x3a1   : > { %v1557_v7 = vpop.xlane.xlu0 %1556  ;;  %v1124_v46 = vpop.xlane.xlu1 %1123  ;;  %v1184_v21 = vmul.f32 0.6931472, %v2352_v18  ;;  %v1789_v33 = vsel %vm1745_vm3, %v1735_v26, 0.0 }
 0x3a2   : > { %2359 = vlog2.f32 %v1124_v46  ;;  %v1605_v40 = vsub.f32 %v1218_v16, %v1557_v7  ;;  %v2354_v28 = vpop.eup %2353  ;;  %v1790_v63 = vadd.f32 %v1789_v33, %v1788_v44  ;;  %v4144_v7 = vld [vmem:[#allocation66_spill] sm:$0xff]  ;;  %v1678_v46 = vadd.s32 %v3637_v39, %v1645_v24 }
 0x3a3   : > { %v1182_v58 = vmul.f32 0.6931472, %v2354_v28  ;;  %v1221_v19 = vadd.f32 %v1184_v21, %v3340_v37  ;;  %vm1711_vm0 = vcmp.lt.s32.totalorder %v1679_v52, 300 }
 0x3a4   : > { %v2356_v32 = vpop.eup %2355  ;;  %v1736_v42 = vsel %vm1704_vm10, %v1605_v40, 0.0  ;;  %vm1710_vm1 = vcmp.lt.s32.totalorder %v1678_v46, 300 }
 0x3a5   : > { %v1560_v54 = vpop.xlane.xlu0 %1559  ;;  %v1127_v60 = vpop.xlane.xlu1 %1126  ;;  %v1791_v5 = vsel %vm1745_vm3, %v1736_v42, 0.0  ;;  %v1186_v23 = vmul.f32 0.6931472, %v2356_v32  ;;  %v1220_v47 = vadd.f32 %v1182_v58, %v4143_v50 }
 0x3a6   : > { %v1606_v13 = vsub.f32 %v1219_v48, %v1560_v54  ;;  %2361 = vlog2.f32 %v1127_v60  ;;  %v1792_v51 = vadd.f32 %v1791_v5, %v1790_v63  ;;  %v4145_v60 = vld [vmem:[#allocation67_spill] sm:$0xff] }
 0x3a7   : > { %v1222_v41 = vadd.f32 %v1186_v23, %v4144_v7 }
 0x3a8   : > { %v2358_v31 = vpop.eup %2357  ;;  %v1737_v59 = vsel %vm1705_vm11, %v1606_v13, 0.0 }
 0x3a9   : > { %v1566_v30 = vpop.xlane.xlu0 %1565  ;;  %v1130_v9 = vpop.xlane.xlu1 %1129  ;;  %v1188_v8 = vmul.f32 0.6931472, %v2358_v31  ;;  %v1793_v2 = vsel %vm1745_vm3, %v1737_v59, 0.0 }
 0x3aa   : > { %2363 = vlog2.f32 %v1130_v9  ;;  %v1608_v53 = vsub.f32 %v1221_v19, %v1566_v30  ;;  %v1794_v36 = vadd.f32 %v1793_v2, %v1792_v51 }
 0x3ab   : > { %v1223_v6 = vadd.f32 %v1188_v8, %v3384_v11  ;;  %v1647_v11 = vadd.s32 248, %v4127_v56 }
 0x3ac   : > { %v2360_v0 = vpop.eup %2359  ;;  %v1739_v29 = vsel %vm1707_vm12, %v1608_v53, 0.0 }
 0x3ad   : > { %v1563_v57 = vpop.xlane.xlu1 %1562  ;;  %v1572_v35 = vpop.xlane.xlu0 %1571  ;;  %v1190_v16 = vmul.f32 0.6931472, %v2360_v0  ;;  %v1797_v15 = vsel %vm1745_vm3, %v1739_v29, 0.0  ;;  %v1680_v32 = vadd.s32 %v3637_v39, %v1647_v11 }
 0x3ae   : > { %v1607_v37 = vsub.f32 %v1220_v47, %v1563_v57  ;;  %v1610_v10 = vsub.f32 %v1223_v6, %v1572_v35 }
 0x3af   : > { %v1224_v13 = vadd.f32 %v1190_v16, %v4145_v60  ;;  %vm1712_vm2 = vcmp.lt.s32.totalorder %v1680_v32, 300 }
 0x3b0   : > { %v2362_v45 = vpop.eup %2361  ;;  %v1738_v4 = vsel %vm1706_vm13, %v1607_v37, 0.0  ;;  %v1741_v22 = vsel %vm1709_vm14, %v1610_v10, 0.0 }
 0x3b1   : > { %v1192_v18 = vmul.f32 0.6931472, %v2362_v45  ;;  %v1795_v34 = vsel %vm1745_vm3, %v1738_v4, 0.0  ;;  %v1569_v40 = vpop.xlane.xlu1 %1568  ;;  %v1578_v26 = vpop.xlane.xlu0 %1577 }
 0x3b2   : > { %v1796_v17 = vadd.f32 %v1795_v34, %v1794_v36  ;;  %v1609_v48 = vsub.f32 %v1222_v41, %v1569_v40 }
 0x3b3   : > { %v1225_v54 = vadd.f32 %v1192_v18, %v3505_v1  ;;  %v1801_v1 = vsel %vm1745_vm3, %v1741_v22, 0.0 }
 0x3b4   : > { %v2364_v49 = vpop.eup %2363  ;;  %v1740_v28 = vsel %vm1708_vm15, %v1609_v48, 0.0  ;;  %v1798_v12 = vadd.f32 %v1797_v15, %v1796_v17 }
 0x3b5   : > { %v1194_v25 = vmul.f32 0.6931472, %v2364_v49  ;;  %v1799_v21 = vsel %vm1745_vm3, %v1740_v28, 0.0  ;;  %v1612_v56 = vsub.f32 %v1225_v54, %v1578_v26  ;;  %v1575_v43 = vpop.xlane.xlu1 %1574 }
 0x3b6   : > { %v1800_v38 = vadd.f32 %v1799_v21, %v1798_v12  ;;  %v1611_v42 = vsub.f32 %v1224_v13, %v1575_v43 }
 0x3b7   : > { %v1226_v31 = vadd.f32 %v1194_v25, %v3501_v61  ;;  %v1743_v58 = vsel %vm1711_vm0, %v1612_v56, 0.0 }
 0x3b8   : > { %v1742_v33 = vsel %vm1710_vm1, %v1611_v42, 0.0  ;;  %v1802_v62 = vadd.f32 %v1801_v1, %v1800_v38  ;;  %v1805_v39 = vsel %vm1745_vm3, %v1743_v58, 0.0 }
 0x3b9   : > { %v1803_v30 = vsel %vm1745_vm3, %v1742_v33, 0.0  ;;  %v1581_v3 = vpop.xlane.xlu1 %1580 }
 0x3ba   : > { %v1804_v44 = vadd.f32 %v1803_v30, %v1802_v62  ;;  %v1613_v59 = vsub.f32 %v1226_v31, %v1581_v3 }
 0x3bc   : > { %v1744_v9 = vsel %vm1712_vm2, %v1613_v59, 0.0  ;;  %v1806_v20 = vadd.f32 %v1805_v39, %v1804_v44 }
 0x3bd   : > { %v1807_v14 = vsel %vm1745_vm3, %v1744_v9, 0.0 }
 0x3be   : > { %v1808_v61 = vadd.f32 %v1807_v14, %v1806_v20 }
 0x3c0   : > { %1809 = vadd.xlane.f32.xlu0 %v1808_v61 }
 0x44d   : > { %v1810_v8 = vpop.xlane.xlu0 %1809 }
 0x44e   : > { %v1811_v5 = vrot.slane %v1810_v8, 4 }
 0x450   : > { %v1812_v19 = vadd.f32 %v1811_v5, %v1810_v8 }
 0x452   : > { %v1813_v23 = vrot.slane %v1812_v19, 2 }
 0x454   : > { %v1814_v63 = vadd.f32 %v1813_v23, %v1812_v19 }
 0x456   : > { %v1815_v55 = vrot.slane %v1814_v63, 1 }
 0x458   : > { %v1816_v24 = vadd.f32 %v1815_v55, %v1814_v63 }
 0x45a   : > { %2076 = vpush %v1816_v24 }
 0x48b   : > { %s2077_s10 = spop %2076 }
 0x48c   : > { %v1818_v2 = vstv %s2077_s10 }
 0x48d   : > { %1820 = vst.msk [vmem:[%s281_s26] sm:$0x1] %vm1819_vm4, %v1818_v2 }
 0x48e   : > { %2494 = shalt.err (!%p2491_p5)
}
 0x48f   : > { %s2495_s0 = scalar_lea.hbm %s3877_s6, 16  ;;  %s2499_s5 = scalar_lea.hbm %s3925_s4, 32 }
 0x490   : > { %p2496_p3 = scmp.ne.s32.totalorder %s3877_s6, %s2495_s0  ;;  %p2500_p0 = scmp.lt.u32.totalorder %s3877_s6, %s3925_s4 }
 0x491   : > { %p2501_p11 = scmp.lt.u32.totalorder %s2499_s5, %s2495_s0  ;;  %p2503_p1 = scmp.lt.u32.totalorder %s2495_s0, %s3877_s6 }
 0x492   : > { %p2497_p7 = pnand %p2496_p3, %p4146_p12 }
 0x493   : > { %p2502_p8 = por %p2501_p11, %p2500_p0 }
 0x494   : > { %p2498_p9 = pneg %p2497_p7 }
 0x495   : > { %p2504_p2 = por %p2503_p1, %p2502_p8 }
 0x497   : > { %p2505_p13 = pnand %p2504_p2, %p2498_p9 }
 0x499   : > { %2508 = shalt.err (!%p2505_p13)
}
 0x49a   : > { %2090 = dma.vmem_to_hbm [thread:$0]  (%p4146_p12), %s3879_s24, 16, %s3877_s6, %s1822_s28  }
 0x49b PF: > { %s1846_s21 = sand.u32 1, %s2543_s15   ;;  %p4147_p6 = scmp.ne.s32.totalorder %s4023_s22, 0 }
 0x49c   : > { %p4148_p10 = scmp.ge.s32.totalorder %s2555_s18, 2  ;;  %s1847_s25 = scalar_lea.sflag [#allocation4], %s1846_s21 }
 0x49e   : > { %p2107_p4 = pnand %p4148_p10, %p4147_p6 }
 0x4a0   : > { %2538 = dma.done.wait (!%p2107_p4), %s1847_s25, 16  }
 0x4a1   : > { %2540 = vsyncadd (!%p2107_p4), %s1847_s25, 4294967280  ;;  %p21_p5 = scmp.ge.s32.totalorder %s2702_s9, 4   ;;  %s4149_s15 = smov %s2547_s16 }
 0x4a2   : > { %s4150_s16 = smov %s2551_s17  ;;  %s4151_s17 = smov %s2718_s12 }
 0x4a3   : > { %s4152_s18 = smov %s2702_s9  ;;  %23 = sbr.rel (!%p21_p5) target bundleno = 10 (0xa), region = 102 }
 0x4aa   :  { %1851 = vsyncpa [#allocation3], 1 }
 0x4ab   :  { %1853 = vsyncpa [#allocation3 + $0x1], 1 }
 0x4ac   :  { %1854 = vsyncpa [#allocation6], 1 }
 0x4ad   :  { %1855 = vsyncpa [#allocation9], 1 }
 0x4ae   :  { %1857 = vsyncpa [#allocation9 + $0x1], 1 }
 0x4af   :  { %1858 = vsyncpa [#allocation4], 1 }
 0x4b0   :  { %1860 = vsyncpa [#allocation4 + $0x1], 1 }

</bundles_post_ra>
